<compile_context>
chip_gen: v5e
topology: v5e:2x2
jax: 0.10.0
libtpu: 0.0.40
codegen_flags: <defaults>
</compile_context>

<pallas_src>
import functools

import jax
import jax.numpy as jnp
from jax import lax
from jax.experimental import pallas as pl
from jax.experimental.pallas import tpu as pltpu

_EPS = 1e-5
_LANES = 128


def _round_up(x, m):
    return ((x + m - 1) // m) * m


# ----------------------------- Pallas kernel ------------------------------- #
def _bottleneck_kernel(x_ref, pos_ref, w1_ref, b1_ref, w2_ref, b2_ref,
                       w3_ref, b3_ref, out_ref, *, H, W, dil):
    rows = x_ref.shape[0]

    # ---- conv1: 1x1 conv == matmul (BN scale folded into w1), bias + ReLU ---
    y1 = jnp.dot(x_ref[...].astype(jnp.bfloat16), w1_ref[...],
                 preferred_element_type=jnp.float32)
    y1 = jnp.maximum(y1 + b1_ref[...], 0.0)             # [rows, Cmid_p] f32

    # ---- conv2: 3x3 dilated conv -------------------------------------------
    # Each tap is y1 shifted by (ky*dil*W + kx*dil) rows via pltpu.roll on the
    # sublane axis (XLU slot), with image borders masked from the per-row
    # packed (h, w) positions.  The 9 lane-aligned taps are concatenated along
    # lanes and fed to one fused K = 9*Cmid_p MXU matmul.
    # TODO(synk): on v7x, 9 per-tap matmuls accumulated in the MRB would avoid
    # the concat; the fused-K form is kept since it is best on v5e/v6e's MRF.
    pos = pos_ref[...]                                   # [rows, 1] int32
    h = pos >> 16
    w = pos & 0xFFFF

    taps = []
    for ky in range(3):
        dy = (ky - 1) * dil
        for kx in range(3):
            dx = (kx - 1) * dil
            shift = (-(dy * W + dx)) % rows
            shifted = pltpu.roll(y1, shift=shift, axis=0) if shift else y1
            valid = ((h + dy >= 0) & (h + dy < H) &
                     (w + dx >= 0) & (w + dx < W))
            taps.append(jnp.where(valid, shifted, 0.0).astype(jnp.bfloat16))
    pmat = jnp.concatenate(taps, axis=1)                 # [rows, 9*Cmid_p] bf16
    y2 = jnp.dot(pmat, w2_ref[...], preferred_element_type=jnp.float32)
    y2 = jnp.maximum(y2 + b2_ref[...], 0.0)              # [rows, Cmid_p] f32

    # ---- conv3: 1x1 conv, bias + ReLU, then residual add --------------------
    # ReLU before the add and none after: this matches the spec module (conv3
    # is Conv+BN+ReLU followed by `out + identity`), not torchvision Bottleneck.
    y3 = jnp.dot(y2.astype(jnp.bfloat16), w3_ref[...],
                 preferred_element_type=jnp.float32)
    y3 = jnp.maximum(y3 + b3_ref[...], 0.0)              # [rows, Cin_p] f32
    # x is re-read here (not held live across the three matmuls) to keep vreg
    # pressure low at realistic rows / Cin.
    out_ref[...] = (y3 + x_ref[...].astype(jnp.float32)).astype(out_ref.dtype)


# ------------------------- block sizing / VMEM budget ----------------------- #
def _vmem_capacity_bytes():
    try:
        return int(pltpu.get_tpu_info().vmem_capacity_bytes)
    except Exception:
        return 64 * 1024 * 1024          # v7x-safe fallback


def _block_vmem_bytes(rows, cin_p, cmid_p):
    """Generous per-kernel VMEM estimate for one block size (bytes)."""
    io = 2 * 2 * rows * cin_p * 4                         # double-buffered in+out f32
    pos = 2 * rows * _LANES * 4                           # (rows,1) int32 pads to 128 lanes
    wts = 2 * 2 * (cin_p * cmid_p + 9 * cmid_p * cmid_p + cmid_p * cin_p)  # bf16 weights
    tmp = rows * (cmid_p * 4 + 9 * cmid_p * 2 + cmid_p * 4 + cin_p * 4)    # y1/pmat/y2/y3
    return io + pos + wts + tmp


def _choose_images_per_block(N, HW, cin_p, cmid_p, vmem_budget, target_rows=1024):
    """Images per grid step: rows%8==0, VMEM-fitting, ~1K rows, multi-step grid."""
    legal = [nb for nb in range(1, N + 1)
             if N % nb == 0 and (nb * HW) % 8 == 0]
    if not legal:
        raise ValueError("cannot tile N*H*W rows into multiples of 8 "
                         "(needs spatial tiling with halo, not implemented)")
    fitting = [nb for nb in legal
               if _block_vmem_bytes(nb * HW, cin_p, cmid_p) <= vmem_budget]
    cands = fitting or [min(legal)]

    def score(nb):
        rows, steps = nb * HW, N // nb
        return (-abs(rows - target_rows) / float(target_rows)   # ~1K-row sweet spot
                + 0.5 * min(steps, 4))                           # keep a multi-step grid
    return max(cands, key=score)


# --------------------------------- wrapper ----------------------------------- #
def bottleneck_forward(x_nchw, kp, dilation=1):
    """x_nchw: [N, Cin, H, W] float32; kp: folded params from _fold_params."""
    N, Cin, H, W = x_nchw.shape
    assert Cin == kp["Cin"]
    cin_p, cmid_p = kp["Cin_p"], kp["Cmid_p"]
    HW = H * W

    # Layout plumbing done once: NCHW -> NHWC -> matmul-ready [N*HW, Cin_p].
    x2d = jnp.transpose(x_nchw, (0, 2, 3, 1)).reshape(N * HW, Cin)
    if cin_p != Cin:
        x2d = jnp.pad(x2d, ((0, 0), (0, cin_p - Cin)))

    vmem_cap = _vmem_capacity_bytes()            # 64 MiB v7x, 128 MiB v5e/v6e
    nb = _choose_images_per_block(N, HW, cin_p, cmid_p,
                                  vmem_budget=vmem_cap // 2)
    rows = nb * HW
    grid = (N // nb,)
    est = _block_vmem_bytes(rows, cin_p, cmid_p)
    vmem_limit = int(min(vmem_cap * 3 // 4, max(2 * est, 48 * 1024 * 1024)))

    # Per-row packed (h, w) positions for border masking; identical for every
    # block (whole images per block) so it stays resident via a constant
    # index_map and is only DMA'd once per core.
    hh = jnp.arange(H, dtype=jnp.int32)
    ww = jnp.arange(W, dtype=jnp.int32)
    pos = jnp.tile(((hh[:, None] << 16) | ww[None, :]).reshape(HW, 1), (nb, 1))

    kernel = functools.partial(_bottleneck_kernel, H=H, W=W, dil=dilation)

    grid_spec = pltpu.PrefetchScalarGridSpec(
        num_scalar_prefetch=0,
        grid=grid,
        in_specs=[
            pl.BlockSpec((rows, cin_p), lambda g: (g, 0)),         # x block
            pl.BlockSpec((rows, 1), lambda g: (0, 0)),             # packed (h,w)
            pl.BlockSpec((cin_p, cmid_p), lambda g: (0, 0)),       # w1
            pl.BlockSpec((1, cmid_p), lambda g: (0, 0)),           # b1
            pl.BlockSpec((9 * cmid_p, cmid_p), lambda g: (0, 0)),  # w2 (9 taps)
            pl.BlockSpec((1, cmid_p), lambda g: (0, 0)),           # b2
            pl.BlockSpec((cmid_p, cin_p), lambda g: (0, 0)),       # w3
            pl.BlockSpec((1, cin_p), lambda g: (0, 0)),            # b3
        ],
        out_specs=pl.BlockSpec((rows, cin_p), lambda g: (g, 0)),
    )

    out2d = pl.pallas_call(
        kernel,
        out_shape=jax.ShapeDtypeStruct((N * HW, cin_p), x_nchw.dtype),
        grid_spec=grid_spec,
        compiler_params=pltpu.CompilerParams(
            dimension_semantics=("parallel",),
            vmem_limit_bytes=vmem_limit),
    )(x2d, pos, kp["w1"], kp["b1"], kp["w2"], kp["b2"], kp["w3"], kp["b3"])

    out = out2d[:, :Cin].reshape(N, H, W, Cin)
    return jnp.transpose(out, (0, 3, 1, 2))              # back to NCHW


# ------------------------ parameter init / folding -------------------------- #
def init_torch_params(key, in_channels, mid_channels):
    """Deterministic synthetic params, stored in PyTorch layouts (OIHW etc.)."""
    ks = jax.random.split(key, 16)
    f32 = jnp.float32

    def conv_w(k, shape):
        fan_in = shape[1] * shape[2] * shape[3]
        return jax.random.normal(k, shape, f32) / jnp.sqrt(float(fan_in))

    def bn(k, c):
        k1, k2, k3, k4 = jax.random.split(k, 4)
        gamma = 1.0 + 0.1 * jax.random.normal(k1, (c,), f32)
        beta = 0.1 * jax.random.normal(k2, (c,), f32)
        mean = 0.1 * jax.random.normal(k3, (c,), f32)
        var = 0.5 + jnp.abs(jax.random.normal(k4, (c,), f32))
        return (gamma, beta, mean, var)

    return {
        "w1": conv_w(ks[0], (mid_channels, in_channels, 1, 1)),
        "cb1": 0.1 * jax.random.normal(ks[1], (mid_channels,), f32),
        "bn1": bn(ks[2], mid_channels),
        "w2": conv_w(ks[3], (mid_channels, mid_channels, 3, 3)),
        "cb2": 0.1 * jax.random.normal(ks[4], (mid_channels,), f32),
        "bn2": bn(ks[5], mid_channels),
        "w3": conv_w(ks[6], (in_channels, mid_channels, 1, 1)),
        "cb3": 0.1 * jax.random.normal(ks[7], (in_channels,), f32),
        "bn3": bn(ks[8], in_channels),
    }


def _fold_params(tp):
    """Fold eval-mode BN into the conv weights/biases, pad all channel dims to
    a multiple of 128 lanes, and convert to the kernel's bf16 matmul layouts."""
    Cmid, Cin = tp["w1"].shape[0], tp["w1"].shape[1]
    cmid_p, cin_p = _round_up(Cmid, _LANES), _round_up(Cin, _LANES)

    def scale_bias(cb, bn):
        gamma, beta, mean, var = bn
        s = gamma / jnp.sqrt(var + _EPS)
        return s, beta + (cb - mean) * s

    s1, b1 = scale_bias(tp["cb1"], tp["bn1"])
    s2, b2 = scale_bias(tp["cb2"], tp["bn2"])
    s3, b3 = scale_bias(tp["cb3"], tp["bn3"])

    # conv1: OIHW [Cmid,Cin,1,1] -> [Cin_p, Cmid_p] bf16 (zero-padded).
    w1 = jnp.transpose(tp["w1"][:, :, 0, 0]) * s1[None, :]
    w1 = jnp.pad(w1, ((0, cin_p - Cin), (0, cmid_p - Cmid))).astype(jnp.bfloat16)

    # conv2: OIHW -> [ky,kx,in,out], pad in/out, -> [9*Cmid_p, Cmid_p] bf16.
    w2 = jnp.transpose(tp["w2"], (2, 3, 1, 0)) * s2[None, None, None, :]
    w2 = jnp.pad(w2, ((0, 0), (0, 0), (0, cmid_p - Cmid), (0, cmid_p - Cmid)))
    w2 = w2.reshape(9 * cmid_p, cmid_p).astype(jnp.bfloat16)

    # conv3: OIHW [Cin,Cmid,1,1] -> [Cmid_p, Cin_p] bf16.
    w3 = jnp.transpose(tp["w3"][:, :, 0, 0]) * s3[None, :]
    w3 = jnp.pad(w3, ((0, cmid_p - Cmid), (0, cin_p - Cin))).astype(jnp.bfloat16)

    return {
        "w1": w1, "b1": jnp.pad(b1, (0, cmid_p - Cmid)).reshape(1, cmid_p),
        "w2": w2, "b2": jnp.pad(b2, (0, cmid_p - Cmid)).reshape(1, cmid_p),
        "w3": w3, "b3": jnp.pad(b3, (0, cin_p - Cin)).reshape(1, cin_p),
        "Cin": Cin, "Cmid": Cmid, "Cin_p": cin_p, "Cmid_p": cmid_p,
    }


# ----------------------------- pure-JAX reference --------------------------- #
def ref_forward(x, tp, dilation):
    def block(h, w_oihw, cb, bn, dil, pad):
        gamma, beta, mean, var = bn
        y = lax.conv_general_dilated(
            h, w_oihw, window_strides=(1, 1),
            padding=[(pad, pad), (pad, pad)],
            rhs_dilation=(dil, dil),
            dimension_numbers=("NCHW", "OIHW", "NCHW"),
            precision=lax.Precision.HIGHEST)
        y = y + cb[None, :, None, None]
        y = (gamma[None, :, None, None] * (y - mean[None, :, None, None])
             / jnp.sqrt(var[None, :, None, None] + _EPS)
             + beta[None, :, None, None])
        return jnp.maximum(y, 0.0)

    out = block(x, tp["w1"], tp["cb1"], tp["bn1"], 1, 0)
    out = block(out, tp["w2"], tp["cb2"], tp["bn2"], dilation, dilation)
    out = block(out, tp["w3"], tp["cb3"], tp["bn3"], 1, 0)
    return out + x


# ---------------------------------- main ------------------------------------ #
if __name__ == "__main__":
    key = jax.random.PRNGKey(0)
    kx, kparam = jax.random.split(key)

    N, Cin, Cmid, H, W = 2, 32, 8, 8, 8
    x = jax.random.normal(kx, (N, Cin, H, W), jnp.float32)
    torch_params = init_torch_params(kparam, Cin, Cmid)
    kernel_params = _fold_params(torch_params)

    for dilation in (1, 2):
        out = jax.block_until_ready(
            bottleneck_forward(x, kernel_params, dilation=dilation))
        ref = ref_forward(x, torch_params, dilation)
        assert out.shape == x.shape == ref.shape
        max_err = float(jnp.max(jnp.abs(out - ref)))
        # bf16 MXU inputs / f32 accumulation -> relaxed tolerance.
        assert jnp.allclose(out, ref, atol=2e-2, rtol=2e-2), (
            f"dilation={dilation}: max abs err = {max_err}")

    print("KERNEL_OK")
</pallas_src>

<mosaic_0001>
module attributes {stable_mosaic.version = 11 : i64} {
  func.func @_bottleneck_kernel(%arg0: i32, %arg1: memref<64x128xf32, #tpu.memory_space<vmem>>, %arg2: memref<64x1xi32, #tpu.memory_space<vmem>>, %arg3: memref<128x128xbf16, #tpu.memory_space<vmem>>, %arg4: memref<1x128xf32, #tpu.memory_space<vmem>>, %arg5: memref<1152x128xbf16, #tpu.memory_space<vmem>>, %arg6: memref<1x128xf32, #tpu.memory_space<vmem>>, %arg7: memref<128x128xbf16, #tpu.memory_space<vmem>>, %arg8: memref<1x128xf32, #tpu.memory_space<vmem>>, %arg9: memref<64x128xf32, #tpu.memory_space<vmem>>) attributes {dimension_semantics = [#tpu.dimension_semantics<parallel>], iteration_bounds = array<i64: 2>, scalar_prefetch = 0 : i64, scratch_operands = 0 : i64, tpu.core_type = #tpu.core_type<tc>, window_params = [{transform_indices = @transform_0, window_bounds = array<i64: 64, 128>}, {pipeline_mode = #tpu.pipeline_mode<synchronous>, transform_indices = @transform_1, window_bounds = array<i64: 64, 1>}, {pipeline_mode = #tpu.pipeline_mode<synchronous>, transform_indices = @transform_2, window_bounds = array<i64: 128, 128>}, {pipeline_mode = #tpu.pipeline_mode<synchronous>, transform_indices = @transform_3, window_bounds = array<i64: 1, 128>}, {pipeline_mode = #tpu.pipeline_mode<synchronous>, transform_indices = @transform_4, window_bounds = array<i64: 1152, 128>}, {pipeline_mode = #tpu.pipeline_mode<synchronous>, transform_indices = @transform_5, window_bounds = array<i64: 1, 128>}, {pipeline_mode = #tpu.pipeline_mode<synchronous>, transform_indices = @transform_6, window_bounds = array<i64: 128, 128>}, {pipeline_mode = #tpu.pipeline_mode<synchronous>, transform_indices = @transform_7, window_bounds = array<i64: 1, 128>}, {transform_indices = @transform_8, window_bounds = array<i64: 64, 128>}]} {
    %c0 = arith.constant 0 : index
    %c0_0 = arith.constant 0 : index
    %0 = vector.load %arg1[%c0, %c0_0] : memref<64x128xf32, #tpu.memory_space<vmem>>, vector<64x128xf32>
    %1 = arith.truncf %0 : vector<64x128xf32> to vector<64x128xbf16>
    %c0_1 = arith.constant 0 : index
    %c0_2 = arith.constant 0 : index
    %2 = vector.load %arg3[%c0_1, %c0_2] : memref<128x128xbf16, #tpu.memory_space<vmem>>, vector<128x128xbf16>
    %cst = arith.constant dense<0.000000e+00> : vector<64x128xf32>
    %3 = tpu.matmul %1, %2, %cst {dimension_numbers = #tpu.dot_dimension_numbers<[1], [0], [0], [1], [0, 0, 1, 1], [], []>} : vector<64x128xbf16>, vector<128x128xbf16>, vector<64x128xf32> -> vector<64x128xf32>
    %c0_3 = arith.constant 0 : index
    %c0_4 = arith.constant 0 : index
    %4 = vector.load %arg4[%c0_3, %c0_4] : memref<1x128xf32, #tpu.memory_space<vmem>>, vector<1x128xf32>
    %5 = vector.broadcast %4 : vector<1x128xf32> to vector<64x128xf32>
    %6 = arith.addf %3, %5 : vector<64x128xf32>
    %cst_5 = arith.constant 0.000000e+00 : f32
    %7 = vector.broadcast %cst_5 : f32 to vector<64x128xf32>
    %8 = arith.maximumf %6, %7 : vector<64x128xf32>
    %c0_6 = arith.constant 0 : index
    %c0_7 = arith.constant 0 : index
    %9 = vector.load %arg2[%c0_6, %c0_7] : memref<64x1xi32, #tpu.memory_space<vmem>>, vector<64x1xi32>
    %c16_i32 = arith.constant 16 : i32
    %10 = vector.broadcast %c16_i32 : i32 to vector<64x1xi32>
    %11 = arith.shrsi %9, %10 : vector<64x1xi32>
    %c65535_i32 = arith.constant 65535 : i32
    %12 = vector.broadcast %c65535_i32 : i32 to vector<64x1xi32>
    %13 = arith.andi %9, %12 : vector<64x1xi32>
    %c9_i32 = arith.constant 9 : i32
    %14 = tpu.dynamic_rotate %8 by %c9_i32 dim 0 : vector<64x128xf32>, i32 -> vector<64x128xf32>
    %c-1_i32 = arith.constant -1 : i32
    %15 = vector.broadcast %c-1_i32 : i32 to vector<64x1xi32>
    %16 = arith.addi %11, %15 : vector<64x1xi32>
    %c0_i32 = arith.constant 0 : i32
    %17 = vector.broadcast %c0_i32 : i32 to vector<64x1xi32>
    %18 = arith.cmpi sge, %16, %17 : vector<64x1xi32>
    %c-1_i32_8 = arith.constant -1 : i32
    %19 = vector.broadcast %c-1_i32_8 : i32 to vector<64x1xi32>
    %20 = arith.addi %11, %19 : vector<64x1xi32>
    %c8_i32 = arith.constant 8 : i32
    %21 = vector.broadcast %c8_i32 : i32 to vector<64x1xi32>
    %22 = arith.cmpi slt, %20, %21 : vector<64x1xi32>
    %23 = arith.andi %18, %22 : vector<64x1xi1>
    %c-1_i32_9 = arith.constant -1 : i32
    %24 = vector.broadcast %c-1_i32_9 : i32 to vector<64x1xi32>
    %25 = arith.addi %13, %24 : vector<64x1xi32>
    %c0_i32_10 = arith.constant 0 : i32
    %26 = vector.broadcast %c0_i32_10 : i32 to vector<64x1xi32>
    %27 = arith.cmpi sge, %25, %26 : vector<64x1xi32>
    %28 = arith.andi %23, %27 : vector<64x1xi1>
    %c-1_i32_11 = arith.constant -1 : i32
    %29 = vector.broadcast %c-1_i32_11 : i32 to vector<64x1xi32>
    %30 = arith.addi %13, %29 : vector<64x1xi32>
    %c8_i32_12 = arith.constant 8 : i32
    %31 = vector.broadcast %c8_i32_12 : i32 to vector<64x1xi32>
    %32 = arith.cmpi slt, %30, %31 : vector<64x1xi32>
    %33 = arith.andi %28, %32 : vector<64x1xi1>
    %cst_13 = arith.constant 0.000000e+00 : f32
    %34 = vector.shape_cast %33 : vector<64x1xi1> to vector<64x1xi1>
    %35 = vector.broadcast %34 : vector<64x1xi1> to vector<64x128xi1>
    %36 = vector.broadcast %cst_13 : f32 to vector<64x128xf32>
    %37 = arith.select %35, %14, %36 : vector<64x128xi1>, vector<64x128xf32>
    %38 = arith.truncf %37 : vector<64x128xf32> to vector<64x128xbf16>
    %c8_i32_14 = arith.constant 8 : i32
    %39 = tpu.dynamic_rotate %8 by %c8_i32_14 dim 0 : vector<64x128xf32>, i32 -> vector<64x128xf32>
    %c-1_i32_15 = arith.constant -1 : i32
    %40 = vector.broadcast %c-1_i32_15 : i32 to vector<64x1xi32>
    %41 = arith.addi %11, %40 : vector<64x1xi32>
    %c0_i32_16 = arith.constant 0 : i32
    %42 = vector.broadcast %c0_i32_16 : i32 to vector<64x1xi32>
    %43 = arith.cmpi sge, %41, %42 : vector<64x1xi32>
    %c-1_i32_17 = arith.constant -1 : i32
    %44 = vector.broadcast %c-1_i32_17 : i32 to vector<64x1xi32>
    %45 = arith.addi %11, %44 : vector<64x1xi32>
    %c8_i32_18 = arith.constant 8 : i32
    %46 = vector.broadcast %c8_i32_18 : i32 to vector<64x1xi32>
    %47 = arith.cmpi slt, %45, %46 : vector<64x1xi32>
    %48 = arith.andi %43, %47 : vector<64x1xi1>
    %c0_i32_19 = arith.constant 0 : i32
    %49 = vector.broadcast %c0_i32_19 : i32 to vector<64x1xi32>
    %50 = arith.addi %13, %49 : vector<64x1xi32>
    %c0_i32_20 = arith.constant 0 : i32
    %51 = vector.broadcast %c0_i32_20 : i32 to vector<64x1xi32>
    %52 = arith.cmpi sge, %50, %51 : vector<64x1xi32>
    %53 = arith.andi %48, %52 : vector<64x1xi1>
    %c0_i32_21 = arith.constant 0 : i32
    %54 = vector.broadcast %c0_i32_21 : i32 to vector<64x1xi32>
    %55 = arith.addi %13, %54 : vector<64x1xi32>
    %c8_i32_22 = arith.constant 8 : i32
    %56 = vector.broadcast %c8_i32_22 : i32 to vector<64x1xi32>
    %57 = arith.cmpi slt, %55, %56 : vector<64x1xi32>
    %58 = arith.andi %53, %57 : vector<64x1xi1>
    %cst_23 = arith.constant 0.000000e+00 : f32
    %59 = vector.shape_cast %58 : vector<64x1xi1> to vector<64x1xi1>
    %60 = vector.broadcast %59 : vector<64x1xi1> to vector<64x128xi1>
    %61 = vector.broadcast %cst_23 : f32 to vector<64x128xf32>
    %62 = arith.select %60, %39, %61 : vector<64x128xi1>, vector<64x128xf32>
    %63 = arith.truncf %62 : vector<64x128xf32> to vector<64x128xbf16>
    %c7_i32 = arith.constant 7 : i32
    %64 = tpu.dynamic_rotate %8 by %c7_i32 dim 0 : vector<64x128xf32>, i32 -> vector<64x128xf32>
    %c-1_i32_24 = arith.constant -1 : i32
    %65 = vector.broadcast %c-1_i32_24 : i32 to vector<64x1xi32>
    %66 = arith.addi %11, %65 : vector<64x1xi32>
    %c0_i32_25 = arith.constant 0 : i32
    %67 = vector.broadcast %c0_i32_25 : i32 to vector<64x1xi32>
    %68 = arith.cmpi sge, %66, %67 : vector<64x1xi32>
    %c-1_i32_26 = arith.constant -1 : i32
    %69 = vector.broadcast %c-1_i32_26 : i32 to vector<64x1xi32>
    %70 = arith.addi %11, %69 : vector<64x1xi32>
    %c8_i32_27 = arith.constant 8 : i32
    %71 = vector.broadcast %c8_i32_27 : i32 to vector<64x1xi32>
    %72 = arith.cmpi slt, %70, %71 : vector<64x1xi32>
    %73 = arith.andi %68, %72 : vector<64x1xi1>
    %c1_i32 = arith.constant 1 : i32
    %74 = vector.broadcast %c1_i32 : i32 to vector<64x1xi32>
    %75 = arith.addi %13, %74 : vector<64x1xi32>
    %c0_i32_28 = arith.constant 0 : i32
    %76 = vector.broadcast %c0_i32_28 : i32 to vector<64x1xi32>
    %77 = arith.cmpi sge, %75, %76 : vector<64x1xi32>
    %78 = arith.andi %73, %77 : vector<64x1xi1>
    %c1_i32_29 = arith.constant 1 : i32
    %79 = vector.broadcast %c1_i32_29 : i32 to vector<64x1xi32>
    %80 = arith.addi %13, %79 : vector<64x1xi32>
    %c8_i32_30 = arith.constant 8 : i32
    %81 = vector.broadcast %c8_i32_30 : i32 to vector<64x1xi32>
    %82 = arith.cmpi slt, %80, %81 : vector<64x1xi32>
    %83 = arith.andi %78, %82 : vector<64x1xi1>
    %cst_31 = arith.constant 0.000000e+00 : f32
    %84 = vector.shape_cast %83 : vector<64x1xi1> to vector<64x1xi1>
    %85 = vector.broadcast %84 : vector<64x1xi1> to vector<64x128xi1>
    %86 = vector.broadcast %cst_31 : f32 to vector<64x128xf32>
    %87 = arith.select %85, %64, %86 : vector<64x128xi1>, vector<64x128xf32>
    %88 = arith.truncf %87 : vector<64x128xf32> to vector<64x128xbf16>
    %c1_i32_32 = arith.constant 1 : i32
    %89 = tpu.dynamic_rotate %8 by %c1_i32_32 dim 0 : vector<64x128xf32>, i32 -> vector<64x128xf32>
    %c0_i32_33 = arith.constant 0 : i32
    %90 = vector.broadcast %c0_i32_33 : i32 to vector<64x1xi32>
    %91 = arith.addi %11, %90 : vector<64x1xi32>
    %c0_i32_34 = arith.constant 0 : i32
    %92 = vector.broadcast %c0_i32_34 : i32 to vector<64x1xi32>
    %93 = arith.cmpi sge, %91, %92 : vector<64x1xi32>
    %c0_i32_35 = arith.constant 0 : i32
    %94 = vector.broadcast %c0_i32_35 : i32 to vector<64x1xi32>
    %95 = arith.addi %11, %94 : vector<64x1xi32>
    %c8_i32_36 = arith.constant 8 : i32
    %96 = vector.broadcast %c8_i32_36 : i32 to vector<64x1xi32>
    %97 = arith.cmpi slt, %95, %96 : vector<64x1xi32>
    %98 = arith.andi %93, %97 : vector<64x1xi1>
    %c-1_i32_37 = arith.constant -1 : i32
    %99 = vector.broadcast %c-1_i32_37 : i32 to vector<64x1xi32>
    %100 = arith.addi %13, %99 : vector<64x1xi32>
    %c0_i32_38 = arith.constant 0 : i32
    %101 = vector.broadcast %c0_i32_38 : i32 to vector<64x1xi32>
    %102 = arith.cmpi sge, %100, %101 : vector<64x1xi32>
    %103 = arith.andi %98, %102 : vector<64x1xi1>
    %c-1_i32_39 = arith.constant -1 : i32
    %104 = vector.broadcast %c-1_i32_39 : i32 to vector<64x1xi32>
    %105 = arith.addi %13, %104 : vector<64x1xi32>
    %c8_i32_40 = arith.constant 8 : i32
    %106 = vector.broadcast %c8_i32_40 : i32 to vector<64x1xi32>
    %107 = arith.cmpi slt, %105, %106 : vector<64x1xi32>
    %108 = arith.andi %103, %107 : vector<64x1xi1>
    %cst_41 = arith.constant 0.000000e+00 : f32
    %109 = vector.shape_cast %108 : vector<64x1xi1> to vector<64x1xi1>
    %110 = vector.broadcast %109 : vector<64x1xi1> to vector<64x128xi1>
    %111 = vector.broadcast %cst_41 : f32 to vector<64x128xf32>
    %112 = arith.select %110, %89, %111 : vector<64x128xi1>, vector<64x128xf32>
    %113 = arith.truncf %112 : vector<64x128xf32> to vector<64x128xbf16>
    %c0_i32_42 = arith.constant 0 : i32
    %114 = vector.broadcast %c0_i32_42 : i32 to vector<64x1xi32>
    %115 = arith.addi %11, %114 : vector<64x1xi32>
    %c0_i32_43 = arith.constant 0 : i32
    %116 = vector.broadcast %c0_i32_43 : i32 to vector<64x1xi32>
    %117 = arith.cmpi sge, %115, %116 : vector<64x1xi32>
    %c0_i32_44 = arith.constant 0 : i32
    %118 = vector.broadcast %c0_i32_44 : i32 to vector<64x1xi32>
    %119 = arith.addi %11, %118 : vector<64x1xi32>
    %c8_i32_45 = arith.constant 8 : i32
    %120 = vector.broadcast %c8_i32_45 : i32 to vector<64x1xi32>
    %121 = arith.cmpi slt, %119, %120 : vector<64x1xi32>
    %122 = arith.andi %117, %121 : vector<64x1xi1>
    %c0_i32_46 = arith.constant 0 : i32
    %123 = vector.broadcast %c0_i32_46 : i32 to vector<64x1xi32>
    %124 = arith.addi %13, %123 : vector<64x1xi32>
    %c0_i32_47 = arith.constant 0 : i32
    %125 = vector.broadcast %c0_i32_47 : i32 to vector<64x1xi32>
    %126 = arith.cmpi sge, %124, %125 : vector<64x1xi32>
    %127 = arith.andi %122, %126 : vector<64x1xi1>
    %c0_i32_48 = arith.constant 0 : i32
    %128 = vector.broadcast %c0_i32_48 : i32 to vector<64x1xi32>
    %129 = arith.addi %13, %128 : vector<64x1xi32>
    %c8_i32_49 = arith.constant 8 : i32
    %130 = vector.broadcast %c8_i32_49 : i32 to vector<64x1xi32>
    %131 = arith.cmpi slt, %129, %130 : vector<64x1xi32>
    %132 = arith.andi %127, %131 : vector<64x1xi1>
    %cst_50 = arith.constant 0.000000e+00 : f32
    %133 = vector.shape_cast %132 : vector<64x1xi1> to vector<64x1xi1>
    %134 = vector.broadcast %133 : vector<64x1xi1> to vector<64x128xi1>
    %135 = vector.broadcast %cst_50 : f32 to vector<64x128xf32>
    %136 = arith.select %134, %8, %135 : vector<64x128xi1>, vector<64x128xf32>
    %137 = arith.truncf %136 : vector<64x128xf32> to vector<64x128xbf16>
    %c63_i32 = arith.constant 63 : i32
    %138 = tpu.dynamic_rotate %8 by %c63_i32 dim 0 : vector<64x128xf32>, i32 -> vector<64x128xf32>
    %c0_i32_51 = arith.constant 0 : i32
    %139 = vector.broadcast %c0_i32_51 : i32 to vector<64x1xi32>
    %140 = arith.addi %11, %139 : vector<64x1xi32>
    %c0_i32_52 = arith.constant 0 : i32
    %141 = vector.broadcast %c0_i32_52 : i32 to vector<64x1xi32>
    %142 = arith.cmpi sge, %140, %141 : vector<64x1xi32>
    %c0_i32_53 = arith.constant 0 : i32
    %143 = vector.broadcast %c0_i32_53 : i32 to vector<64x1xi32>
    %144 = arith.addi %11, %143 : vector<64x1xi32>
    %c8_i32_54 = arith.constant 8 : i32
    %145 = vector.broadcast %c8_i32_54 : i32 to vector<64x1xi32>
    %146 = arith.cmpi slt, %144, %145 : vector<64x1xi32>
    %147 = arith.andi %142, %146 : vector<64x1xi1>
    %c1_i32_55 = arith.constant 1 : i32
    %148 = vector.broadcast %c1_i32_55 : i32 to vector<64x1xi32>
    %149 = arith.addi %13, %148 : vector<64x1xi32>
    %c0_i32_56 = arith.constant 0 : i32
    %150 = vector.broadcast %c0_i32_56 : i32 to vector<64x1xi32>
    %151 = arith.cmpi sge, %149, %150 : vector<64x1xi32>
    %152 = arith.andi %147, %151 : vector<64x1xi1>
    %c1_i32_57 = arith.constant 1 : i32
    %153 = vector.broadcast %c1_i32_57 : i32 to vector<64x1xi32>
    %154 = arith.addi %13, %153 : vector<64x1xi32>
    %c8_i32_58 = arith.constant 8 : i32
    %155 = vector.broadcast %c8_i32_58 : i32 to vector<64x1xi32>
    %156 = arith.cmpi slt, %154, %155 : vector<64x1xi32>
    %157 = arith.andi %152, %156 : vector<64x1xi1>
    %cst_59 = arith.constant 0.000000e+00 : f32
    %158 = vector.shape_cast %157 : vector<64x1xi1> to vector<64x1xi1>
    %159 = vector.broadcast %158 : vector<64x1xi1> to vector<64x128xi1>
    %160 = vector.broadcast %cst_59 : f32 to vector<64x128xf32>
    %161 = arith.select %159, %138, %160 : vector<64x128xi1>, vector<64x128xf32>
    %162 = arith.truncf %161 : vector<64x128xf32> to vector<64x128xbf16>
    %c57_i32 = arith.constant 57 : i32
    %163 = tpu.dynamic_rotate %8 by %c57_i32 dim 0 : vector<64x128xf32>, i32 -> vector<64x128xf32>
    %c1_i32_60 = arith.constant 1 : i32
    %164 = vector.broadcast %c1_i32_60 : i32 to vector<64x1xi32>
    %165 = arith.addi %11, %164 : vector<64x1xi32>
    %c0_i32_61 = arith.constant 0 : i32
    %166 = vector.broadcast %c0_i32_61 : i32 to vector<64x1xi32>
    %167 = arith.cmpi sge, %165, %166 : vector<64x1xi32>
    %c1_i32_62 = arith.constant 1 : i32
    %168 = vector.broadcast %c1_i32_62 : i32 to vector<64x1xi32>
    %169 = arith.addi %11, %168 : vector<64x1xi32>
    %c8_i32_63 = arith.constant 8 : i32
    %170 = vector.broadcast %c8_i32_63 : i32 to vector<64x1xi32>
    %171 = arith.cmpi slt, %169, %170 : vector<64x1xi32>
    %172 = arith.andi %167, %171 : vector<64x1xi1>
    %c-1_i32_64 = arith.constant -1 : i32
    %173 = vector.broadcast %c-1_i32_64 : i32 to vector<64x1xi32>
    %174 = arith.addi %13, %173 : vector<64x1xi32>
    %c0_i32_65 = arith.constant 0 : i32
    %175 = vector.broadcast %c0_i32_65 : i32 to vector<64x1xi32>
    %176 = arith.cmpi sge, %174, %175 : vector<64x1xi32>
    %177 = arith.andi %172, %176 : vector<64x1xi1>
    %c-1_i32_66 = arith.constant -1 : i32
    %178 = vector.broadcast %c-1_i32_66 : i32 to vector<64x1xi32>
    %179 = arith.addi %13, %178 : vector<64x1xi32>
    %c8_i32_67 = arith.constant 8 : i32
    %180 = vector.broadcast %c8_i32_67 : i32 to vector<64x1xi32>
    %181 = arith.cmpi slt, %179, %180 : vector<64x1xi32>
    %182 = arith.andi %177, %181 : vector<64x1xi1>
    %cst_68 = arith.constant 0.000000e+00 : f32
    %183 = vector.shape_cast %182 : vector<64x1xi1> to vector<64x1xi1>
    %184 = vector.broadcast %183 : vector<64x1xi1> to vector<64x128xi1>
    %185 = vector.broadcast %cst_68 : f32 to vector<64x128xf32>
    %186 = arith.select %184, %163, %185 : vector<64x128xi1>, vector<64x128xf32>
    %187 = arith.truncf %186 : vector<64x128xf32> to vector<64x128xbf16>
    %c56_i32 = arith.constant 56 : i32
    %188 = tpu.dynamic_rotate %8 by %c56_i32 dim 0 : vector<64x128xf32>, i32 -> vector<64x128xf32>
    %c1_i32_69 = arith.constant 1 : i32
    %189 = vector.broadcast %c1_i32_69 : i32 to vector<64x1xi32>
    %190 = arith.addi %11, %189 : vector<64x1xi32>
    %c0_i32_70 = arith.constant 0 : i32
    %191 = vector.broadcast %c0_i32_70 : i32 to vector<64x1xi32>
    %192 = arith.cmpi sge, %190, %191 : vector<64x1xi32>
    %c1_i32_71 = arith.constant 1 : i32
    %193 = vector.broadcast %c1_i32_71 : i32 to vector<64x1xi32>
    %194 = arith.addi %11, %193 : vector<64x1xi32>
    %c8_i32_72 = arith.constant 8 : i32
    %195 = vector.broadcast %c8_i32_72 : i32 to vector<64x1xi32>
    %196 = arith.cmpi slt, %194, %195 : vector<64x1xi32>
    %197 = arith.andi %192, %196 : vector<64x1xi1>
    %c0_i32_73 = arith.constant 0 : i32
    %198 = vector.broadcast %c0_i32_73 : i32 to vector<64x1xi32>
    %199 = arith.addi %13, %198 : vector<64x1xi32>
    %c0_i32_74 = arith.constant 0 : i32
    %200 = vector.broadcast %c0_i32_74 : i32 to vector<64x1xi32>
    %201 = arith.cmpi sge, %199, %200 : vector<64x1xi32>
    %202 = arith.andi %197, %201 : vector<64x1xi1>
    %c0_i32_75 = arith.constant 0 : i32
    %203 = vector.broadcast %c0_i32_75 : i32 to vector<64x1xi32>
    %204 = arith.addi %13, %203 : vector<64x1xi32>
    %c8_i32_76 = arith.constant 8 : i32
    %205 = vector.broadcast %c8_i32_76 : i32 to vector<64x1xi32>
    %206 = arith.cmpi slt, %204, %205 : vector<64x1xi32>
    %207 = arith.andi %202, %206 : vector<64x1xi1>
    %cst_77 = arith.constant 0.000000e+00 : f32
    %208 = vector.shape_cast %207 : vector<64x1xi1> to vector<64x1xi1>
    %209 = vector.broadcast %208 : vector<64x1xi1> to vector<64x128xi1>
    %210 = vector.broadcast %cst_77 : f32 to vector<64x128xf32>
    %211 = arith.select %209, %188, %210 : vector<64x128xi1>, vector<64x128xf32>
    %212 = arith.truncf %211 : vector<64x128xf32> to vector<64x128xbf16>
    %c55_i32 = arith.constant 55 : i32
    %213 = tpu.dynamic_rotate %8 by %c55_i32 dim 0 : vector<64x128xf32>, i32 -> vector<64x128xf32>
    %c1_i32_78 = arith.constant 1 : i32
    %214 = vector.broadcast %c1_i32_78 : i32 to vector<64x1xi32>
    %215 = arith.addi %11, %214 : vector<64x1xi32>
    %c0_i32_79 = arith.constant 0 : i32
    %216 = vector.broadcast %c0_i32_79 : i32 to vector<64x1xi32>
    %217 = arith.cmpi sge, %215, %216 : vector<64x1xi32>
    %c1_i32_80 = arith.constant 1 : i32
    %218 = vector.broadcast %c1_i32_80 : i32 to vector<64x1xi32>
    %219 = arith.addi %11, %218 : vector<64x1xi32>
    %c8_i32_81 = arith.constant 8 : i32
    %220 = vector.broadcast %c8_i32_81 : i32 to vector<64x1xi32>
    %221 = arith.cmpi slt, %219, %220 : vector<64x1xi32>
    %222 = arith.andi %217, %221 : vector<64x1xi1>
    %c1_i32_82 = arith.constant 1 : i32
    %223 = vector.broadcast %c1_i32_82 : i32 to vector<64x1xi32>
    %224 = arith.addi %13, %223 : vector<64x1xi32>
    %c0_i32_83 = arith.constant 0 : i32
    %225 = vector.broadcast %c0_i32_83 : i32 to vector<64x1xi32>
    %226 = arith.cmpi sge, %224, %225 : vector<64x1xi32>
    %227 = arith.andi %222, %226 : vector<64x1xi1>
    %c1_i32_84 = arith.constant 1 : i32
    %228 = vector.broadcast %c1_i32_84 : i32 to vector<64x1xi32>
    %229 = arith.addi %13, %228 : vector<64x1xi32>
    %c8_i32_85 = arith.constant 8 : i32
    %230 = vector.broadcast %c8_i32_85 : i32 to vector<64x1xi32>
    %231 = arith.cmpi slt, %229, %230 : vector<64x1xi32>
    %232 = arith.andi %227, %231 : vector<64x1xi1>
    %cst_86 = arith.constant 0.000000e+00 : f32
    %233 = vector.shape_cast %232 : vector<64x1xi1> to vector<64x1xi1>
    %234 = vector.broadcast %233 : vector<64x1xi1> to vector<64x128xi1>
    %235 = vector.broadcast %cst_86 : f32 to vector<64x128xf32>
    %236 = arith.select %234, %213, %235 : vector<64x128xi1>, vector<64x128xf32>
    %237 = arith.truncf %236 : vector<64x128xf32> to vector<64x128xbf16>
    %238 = tpu.concatenate %38, %63, %88, %113, %137, %162, %187, %212, %237 in 1 : vector<64x128xbf16>, vector<64x128xbf16>, vector<64x128xbf16>, vector<64x128xbf16>, vector<64x128xbf16>, vector<64x128xbf16>, vector<64x128xbf16>, vector<64x128xbf16>, vector<64x128xbf16> -> vector<64x1152xbf16>
    %c0_87 = arith.constant 0 : index
    %c0_88 = arith.constant 0 : index
    %239 = vector.load %arg5[%c0_87, %c0_88] : memref<1152x128xbf16, #tpu.memory_space<vmem>>, vector<1152x128xbf16>
    %cst_89 = arith.constant dense<0.000000e+00> : vector<64x128xf32>
    %240 = tpu.matmul %238, %239, %cst_89 {dimension_numbers = #tpu.dot_dimension_numbers<[1], [0], [0], [1], [0, 0, 1, 1], [], []>} : vector<64x1152xbf16>, vector<1152x128xbf16>, vector<64x128xf32> -> vector<64x128xf32>
    %c0_90 = arith.constant 0 : index
    %c0_91 = arith.constant 0 : index
    %241 = vector.load %arg6[%c0_90, %c0_91] : memref<1x128xf32, #tpu.memory_space<vmem>>, vector<1x128xf32>
    %242 = vector.broadcast %241 : vector<1x128xf32> to vector<64x128xf32>
    %243 = arith.addf %240, %242 : vector<64x128xf32>
    %cst_92 = arith.constant 0.000000e+00 : f32
    %244 = vector.broadcast %cst_92 : f32 to vector<64x128xf32>
    %245 = arith.maximumf %243, %244 : vector<64x128xf32>
    %246 = arith.truncf %245 : vector<64x128xf32> to vector<64x128xbf16>
    %c0_93 = arith.constant 0 : index
    %c0_94 = arith.constant 0 : index
    %247 = vector.load %arg7[%c0_93, %c0_94] : memref<128x128xbf16, #tpu.memory_space<vmem>>, vector<128x128xbf16>
    %cst_95 = arith.constant dense<0.000000e+00> : vector<64x128xf32>
    %248 = tpu.matmul %246, %247, %cst_95 {dimension_numbers = #tpu.dot_dimension_numbers<[1], [0], [0], [1], [0, 0, 1, 1], [], []>} : vector<64x128xbf16>, vector<128x128xbf16>, vector<64x128xf32> -> vector<64x128xf32>
    %c0_96 = arith.constant 0 : index
    %c0_97 = arith.constant 0 : index
    %249 = vector.load %arg8[%c0_96, %c0_97] : memref<1x128xf32, #tpu.memory_space<vmem>>, vector<1x128xf32>
    %250 = vector.broadcast %249 : vector<1x128xf32> to vector<64x128xf32>
    %251 = arith.addf %248, %250 : vector<64x128xf32>
    %cst_98 = arith.constant 0.000000e+00 : f32
    %252 = vector.broadcast %cst_98 : f32 to vector<64x128xf32>
    %253 = arith.maximumf %251, %252 : vector<64x128xf32>
    %c0_99 = arith.constant 0 : index
    %c0_100 = arith.constant 0 : index
    %254 = vector.load %arg1[%c0_99, %c0_100] : memref<64x128xf32, #tpu.memory_space<vmem>>, vector<64x128xf32>
    %255 = arith.addf %253, %254 : vector<64x128xf32>
    %c0_101 = arith.constant 0 : index
    %c0_102 = arith.constant 0 : index
    %256 = vector.load %arg9[%c0_101, %c0_102] : memref<64x128xf32, #tpu.memory_space<vmem>>, vector<64x128xf32>
    tpu.vector_store %arg9[%c0_101, %c0_102], %255 {strides = array<i32>} : memref<64x128xf32, #tpu.memory_space<vmem>>, vector<64x128xf32>,
    return
  }
  func.func @transform_0(%arg0: i32) -> (i32, i32) {
    %c0_i32 = arith.constant 0 : i32
    %c0_i32_0 = arith.constant 0 : i32
    return %arg0, %c0_i32 : i32, i32
  }
  func.func @transform_1(%arg0: i32) -> (i32, i32) {
    %c0_i32 = arith.constant 0 : i32
    %c0_i32_0 = arith.constant 0 : i32
    %c0_i32_1 = arith.constant 0 : i32
    return %c0_i32, %c0_i32_0 : i32, i32
  }
  func.func @transform_2(%arg0: i32) -> (i32, i32) {
    %c0_i32 = arith.constant 0 : i32
    %c0_i32_0 = arith.constant 0 : i32
    %c0_i32_1 = arith.constant 0 : i32
    return %c0_i32, %c0_i32_0 : i32, i32
  }
  func.func @transform_3(%arg0: i32) -> (i32, i32) {
    %c0_i32 = arith.constant 0 : i32
    %c0_i32_0 = arith.constant 0 : i32
    %c0_i32_1 = arith.constant 0 : i32
    return %c0_i32, %c0_i32_0 : i32, i32
  }
  func.func @transform_4(%arg0: i32) -> (i32, i32) {
    %c0_i32 = arith.constant 0 : i32
    %c0_i32_0 = arith.constant 0 : i32
    %c0_i32_1 = arith.constant 0 : i32
    return %c0_i32, %c0_i32_0 : i32, i32
  }
  func.func @transform_5(%arg0: i32) -> (i32, i32) {
    %c0_i32 = arith.constant 0 : i32
    %c0_i32_0 = arith.constant 0 : i32
    %c0_i32_1 = arith.constant 0 : i32
    return %c0_i32, %c0_i32_0 : i32, i32
  }
  func.func @transform_6(%arg0: i32) -> (i32, i32) {
    %c0_i32 = arith.constant 0 : i32
    %c0_i32_0 = arith.constant 0 : i32
    %c0_i32_1 = arith.constant 0 : i32
    return %c0_i32, %c0_i32_0 : i32, i32
  }
  func.func @transform_7(%arg0: i32) -> (i32, i32) {
    %c0_i32 = arith.constant 0 : i32
    %c0_i32_0 = arith.constant 0 : i32
    %c0_i32_1 = arith.constant 0 : i32
    return %c0_i32, %c0_i32_0 : i32, i32
  }
  func.func @transform_8(%arg0: i32) -> (i32, i32) {
    %c0_i32 = arith.constant 0 : i32
    %c0_i32_0 = arith.constant 0 : i32
    return %arg0, %c0_i32 : i32, i32
  }
}

</mosaic_0001>

<bundles_post_ra>
// kernel: tpu_custom_call.1
= control target key start
LH: loop header
LB: loop body
LE: loop exit
PB: predicated region body
PF: predicated region fallthrough
CT: control target
= control target key end

     0   :  { %s5097_s0 = inlined_call_operand.hbm [shape: f32[128,128], index: 0, kind: input, shape index: {}]   ;;  %s5098_s1 = inlined_call_operand.vmem [shape: s32[64,1], index: 1, kind: input, shape index: {}]   ;;  %s5099_s2 = inlined_call_operand.vmem [shape: bf16[128,128], index: 2, kind: input, shape index: {}]   ;;  %s5100_s3 = inlined_call_operand.vmem [shape: f32[1,128], index: 3, kind: input, shape index: {}]   ;;  %s5101_s4 = inlined_call_operand.hbm [shape: bf16[1152,128], index: 4, kind: input, shape index: {}]   ;;  %s5102_s5 = inlined_call_operand.vmem [shape: f32[1,128], index: 5, kind: input, shape index: {}]   ;;  %s5103_s6 = inlined_call_operand.hbm [shape: bf16[128,128], index: 6, kind: input, shape index: {}]   ;;  %s5104_s7 = inlined_call_operand.vmem [shape: f32[1,128], index: 7, kind: input, shape index: {}]   ;;  %s5105_s8 = inlined_call_operand.hbm [shape: f32[128,128], index: 8, kind: output, shape index: {}]  }
   0x1   :  { %5189 = sst [smem:[#allocation13_spill]] %s5101_s4 }
   0x2   :  { %5190 = sst [smem:[#allocation14_spill]] %s5103_s6 }
   0x3   :  { %13 = vsyncpa [#allocation3], 0 }
   0x4   :  { %15 = vsyncpa [#allocation3 + $0x1], 0 }
   0x5   :  { %16 = vsyncpa [#allocation6], 0 }
   0x6   :  { %17 = vsyncpa [#allocation4], 0 }
   0x7   :  { %19 = vsyncpa [#allocation4 + $0x1], 0  ;;  %s3424_s27 = smov 0   ;;  %s3426_s28 = smov 0  }
   0x8   :  { %s3428_s29 = smov 0   ;;  %s3430_s30 = smov 0  }
   0x9 LB: > { %s3445_s9 = sadd.s32 4294967295, %s3368_s30   ;;  %s2636_s10 = sadd.s32 4294967294, %s3368_s30   ;;  %s3368_s30 = sphi %s3430_s30, %s5421_s30   ;;  %s3364_s29 = sphi %s3428_s29, %s5420_s29   ;;  %s3360_s28 = sphi %s3426_s28, %s5419_s28   ;;  %s3356_s27 = sphi %s3424_s27, %s5418_s27  }
   0xa   : > { %p45_p0 = scmp.ne.s32.totalorder %s3360_s28, %s3356_s27  ;;  %p46_p1 = scmp.eq.s32.totalorder %s3445_s9, 0 }
   0xb   : > { %p216_p2 = scmp.eq.s32.totalorder %s3445_s9, 1  ;;  %p222_p3 = scmp.eq.s32.totalorder %s2636_s10, 1 }
   0xc   : > { %p3454_p4 = por %p46_p1, %p45_p0  ;;  %p2637_p5 = scmp.ge.s32.totalorder %s3368_s30, 1 }
   0xd   : > { %p3459_p6 = por %p222_p3, %p45_p0  ;;  %p229_p7 = scmp.lt.s32.totalorder %s3368_s30, 3 }
   0xe   : > { %s5193_s4 = sld [smem:[#allocation13_spill]]  ;;  %s3370_s17 = smov [#allocation5]  }
   0xf   : > { %p3467_p8 = pnand %p2637_p5, %p229_p7  ;;  %s251_s18 = sshll.u32 %s3370_s17, 4  ;;  %s252_s18 = int_to_ptr.vmem [resolvable:$true] %s251_s18 }
  0x10   : > { %s5195_s6 = sld [smem:[#allocation14_spill]]  ;;  %s3371_s22 = smov 64  }
  0x11   : > { %p3132_p9 = pneg %p3467_p8  ;;  %s3372_s23 = smov 4  }
  0x12   : > { %s3373_s24 = smov [#allocation7]   ;;  %s3480_s26 = sadd.s32 1, %s3368_s30  }
  0x13   : > { %p3133_p10 = pnand %p3132_p9, %p46_p1  ;;  %s268_s25 = sshll.u32 %s3373_s24, 4  ;;  %s269_s25 = int_to_ptr.vmem [resolvable:$true] %s268_s25 }
  0x14   : > { %s249_s15 = sshll.u32 %s5193_s4, 4  ;;  %s32_s10 = sadd.s32 1, %s3364_s29  ;;  %s250_s15 = int_to_ptr.hbm [resolvable:$true] %s249_s15 }
  0x15   : > { %3135 = dma.hbm_to_vmem [thread:$0]  (!%p3133_p10), %s250_s15, 9216, %s252_s18, [#allocation6], %s3371_s22, %s3371_s22, %s3372_s23  }
  0x16   : > { %s266_s21 = sshll.u32 %s5195_s6, 4  ;;  %s29_s13 = ssub.s32 %s3368_s30, %s3480_s26  ;;  %s267_s21 = int_to_ptr.hbm [resolvable:$true] %s266_s21 }
  0x17   : > { %3138 = dma.hbm_to_vmem [thread:$0]  (!%p3133_p10), %s267_s21, 1024, %s269_s25, [#allocation6], %s3371_s22, %s3371_s22, %s3372_s23  }
  0x18   : > { %p39_p12 = scmp.ne.s32.totalorder %s3364_s29, %s3360_s28  ;;  %p30_p13 = scmp.eq.s32.totalorder %s29_s13, 0 }
  0x19   : > { %p40_p0 = scmp.eq.s32.totalorder %s3368_s30, 0  ;;  %p3149_p5 = scmp.lt.s32.totalorder %s3368_s30, 2 }
  0x1a   : > { %p3490_p3 = por %p216_p2, %p39_p12  ;;  %s285_s17 = sand.u32 1, %s3364_s29  }
  0x1b   : > { %s3496_s15 = scalar_select %p30_p13, %s3364_s29, %s32_s10  }
  0x1c   : > { %p41_p7 = por %p40_p0, %p39_p12  ;;  %s2641_s18 = sshll.u32 %s285_s17, 6 }
  0x1d   : > { %s3006_s19 = sshll.u32 %s3368_s30, 6  ;;  %s289_s23 = scalar_lea.vmem [#allocation2], %s2641_s18 }
  0x1e   : > { %s294_s22 = scalar_lea.hbm %s5097_s0, %s3006_s19  ;;  %s297_s24 = sshll.u32 %s289_s23, 4  ;;  %s298_s24 = int_to_ptr.vmem [resolvable:$true] %s297_s24 }
  0x1f   : > { %s295_s25 = sshll.u32 %s294_s22, 4  ;;  %p3503_p2 = pnand %p3149_p5, %p41_p7  ;;  %s296_s25 = int_to_ptr.hbm [resolvable:$true] %s295_s25 }
  0x20   : > { %s286_s10 = scalar_lea.sflag [#allocation3], %s285_s17  ;;  %s3268_s4 = sshra.s32 %s296_s25, 4  ;;  %s3269_s4 = int_to_ptr.hbm [resolvable:$true] %s3268_s4 }
  0x21   : > { %s3270_s6 = scalar_lea.hbm %s3269_s4, 64  ;;  %p3272_p10 = pneg %p3503_p2 }
  0x22   : > { %p3271_p9 = scmp.ne.s32.totalorder %s3269_s4, %s3270_s6  ;;  %s3275_s20 = scalar_lea.hbm %s5097_s0, 128 }
  0x23   : > { %p3276_p0 = scmp.lt.s32.totalorder %s3269_s4, %s5097_s0  ;;  %p3277_p5 = scmp.lt.s32.totalorder %s3275_s20, %s3270_s6 }
  0x24   : > { %p3273_p12 = pnand %p3272_p10, %p3271_p9 }
  0x25   : > { %p3278_p7 = por %p3277_p5, %p3276_p0 }
  0x26   : > { %p3274_p13 = pneg %p3273_p12 }
  0x28   : > { %p3279_p11 = pnand %p3278_p7, %p3274_p13 }
  0x2a   : > { %3282 = shalt.err (!%p3279_p11)
}
  0x2b   : > { %s3374_s17 = smov 128   ;;  %s3375_s23 = smov 8  }
  0x2c   : > { %3142 = dma.hbm_to_vmem [thread:$0]  (!%p3503_p2), %s296_s25, 1024, %s298_s24, %s286_s10, %s3374_s17, %s3374_s17, %s3375_s23  }
  0x2d   : > { %309 = sbr.rel (%p3467_p8) target bundleno = 713 (0x2c9), region = 52 }
  0x32   : > { %s3520_s19 = sand.u32 1, %s3360_s28  }
  0x33   : > { %s2645_s4 = sshll.u32 %s3520_s19, 6  ;;  %s312_s6 = scalar_lea.sflag [#allocation3], %s3520_s19 }
  0x34   : > { %s3526_s18 = scalar_lea.vmem [#allocation2], %s2645_s4 }
  0x35   : > { %3343 = dma.done.wait (%p3454_p4), %s312_s6, 1024  }
  0x36   : > { %3345 = vsyncadd (%p3454_p4), %s312_s6, 4294966272 }
  0x37   : > { %3347 = dma.done.wait (%p46_p1), [#allocation6], 10240  }
  0x38   : > { %3349 = vsyncadd (%p46_p1), [#allocation6], 4294957056  ;;  %v3376_v0 = vmov 0   ;;  %v3014_v1 = vld [vmem:[%s5099_s2 + $0x38] sm:$0xff]  ;;  %v480_v2 = vld [vmem:[%s5098_s1 + $0x10] sm:$0xff]  ;;  %v5198_v12 = vmov 0 }
  0x39   : > { %3195 = vset.pattern.permute.xlu0 %v3376_v0  ;;  %3194 = vset.pattern.permute.xlu1 %v3376_v0  ;;  %v3545_v3 = vshra.s32 %v480_v2, 16  ;;  %v3547_v4 = vand.u32 65535, %v480_v2  ;;  %v478_v5 = vld [vmem:[%s5098_s1] sm:$0xff]  ;;  %v3013_v6 = vld [vmem:[%s5099_s2 + $0x30] sm:$0xff]  ;;  %v479_v11 = vld [vmem:[%s5098_s1 + $0x8] sm:$0xff]  ;;  %v5200_v14 = vmov 0 }
  0x3a   : > { %3196 = vset.pattern.permute.xlu2 %v3376_v0  ;;  %441 = vmatpush.bf16.msra.mxu0 %v3014_v1  ;;  %v3555_v7 = vshra.s32 %v478_v5, 16  ;;  %v3557_v8 = vand.u32 65535, %v478_v5  ;;  %v481_v15 = vld [vmem:[%s5098_s1 + $0x18] sm:$0xff]  ;;  %v3012_v16 = vld [vmem:[%s5099_s2 + $0x28] sm:$0xff]  ;;  %v3595_v17 = vshra.s32 %v479_v11, 16  ;;  %v3597_v18 = vand.u32 65535, %v479_v11 }
  0x3b   : > { %3096 = vmatpush.bf16.msra.mxu3 %v3014_v1  ;;  %v3560_v9 = vadd.s32 4294967295, %v3547_v4  ;;  %vm852_vm0 = vcmp.ge.s32.totalorder %v3545_v3, 0  ;;  %vm860_vm1 = vcmp.lt.s32.totalorder %v3545_v3, 8  ;;  %v523_v10 = vadd.s32 4294967295, %v3545_v3  ;;  %v3011_v26 = vld [vmem:[%s5099_s2 + $0x20] sm:$0xff]  ;;  %v3010_v31 = vld [vmem:[%s5099_s2 + $0x18] sm:$0xff] }
  0x3c   : > { %vm3568_vm2 = vmand %vm852_vm0, %vm860_vm1  ;;  %v3573_v13 = vadd.s32 4294967295, %v3557_v8  ;;  %vm850_vm3 = vcmp.ge.s32.totalorder %v3555_v7, 0  ;;  %vm858_vm4 = vcmp.lt.s32.totalorder %v3555_v7, 8  ;;  %v3607_v20 = vadd.s32 4294967295, %v3597_v18  ;;  %v482_v32 = vld [vmem:[%s5098_s1 + $0x20] sm:$0xff]  ;;  %v3009_v36 = vld [vmem:[%s5099_s2 + $0x10] sm:$0xff] }
  0x3d   : > { %v5199_v12 = vsel %vm3568_vm2, 4294967295, %v5198_v12  ;;  %vm5107_vm5 = vcmp.ge.s32.totalorder %v3560_v9, 0  ;;  %vm5106_vm6 = vcmp.lt.s32.totalorder %v3560_v9, 8  ;;  %vm3579_vm7 = vmand %vm850_vm3, %vm858_vm4  ;;  %vm531_vm12 = vcmp.ge.s32.totalorder %v523_v10, 0  ;;  %v483_v41 = vld [vmem:[%s5098_s1 + $0x28] sm:$0xff]  ;;  %v3007_v51 = vld [vmem:[%s5099_s2] sm:$0xff] }
  0x3e   : > { %v5201_v14 = vsel %vm3579_vm7, 4294967295, %v5200_v14  ;;  %442 = vmatpush.bf16.msra.mxu0 %v3013_v6  ;;  %vm876_vm8 = vmand %vm3568_vm2, %vm5107_vm5  ;;  %vm5110_vm9 = vcmp.ge.s32.totalorder %v3573_v13, 0  ;;  %vm5109_vm10 = vcmp.lt.s32.totalorder %v3573_v13, 8  ;;  %vm539_vm13 = vcmp.lt.s32.totalorder %v523_v10, 8  ;;  %v3008_v46 = vld [vmem:[%s5099_s2 + $0x8] sm:$0xff]  ;;  %v361_v52 = vld [vmem:[%s3526_s18] sm:$0xff] }
  0x3f   : > { %3097 = vmatpush.bf16.msra.mxu3 %v3013_v6  ;;  %vm884_vm11 = vmand %vm876_vm8, %vm5106_vm6  ;;  %v3609_v21 = vshra.s32 %v481_v15, 16  ;;  %v521_v22 = vadd.s32 4294967295, %v3555_v7  ;;  %v3614_v23 = vand.u32 65535, %v481_v15  ;;  %vm851_vm1 = vcmp.ge.s32.totalorder %v3595_v17, 0  ;;  %v362_v53 = vld [vmem:[%s3526_s18 + $0x8] sm:$0xff]  ;;  %v365_v55 = vld [vmem:[%s3526_s18 + $0x20] sm:$0xff] }
  0x40   : > { %v892_v19 = vsel %vm884_vm11, 1, %v3376_v0  ;;  %vm874_vm14 = vmand %vm3579_vm7, %vm5110_vm9  ;;  %vm859_vm3 = vcmp.lt.s32.totalorder %v3595_v17, 8  ;;  %vm5108_vm8 = vcmp.ge.s32.totalorder %v3607_v20, 0  ;;  %v5204_v29 = vmov 0  ;;  %v366_v56 = vld [vmem:[%s3526_s18 + $0x28] sm:$0xff]  ;;  %v484_v1 = vld [vmem:[%s5098_s1 + $0x30] sm:$0xff] }
  0x41   : > { %905 = vperm.xlu0 %3195, %v892_v19   ;;  %vm882_vm15 = vmand %vm874_vm14, %vm5109_vm10  ;;  %v524_v27 = vadd.s32 4294967295, %v3609_v21  ;;  %vm529_vm14 = vcmp.ge.s32.totalorder %v521_v22, 0  ;;  %v3641_v30 = vadd.s32 4294967295, %v3614_v23  ;;  %v3665_v35 = vshra.s32 %v482_v32, 16  ;;  %v485_v19 = vld [vmem:[%s5098_s1 + $0x38] sm:$0xff]  ;;  %s5046_s25 = scalar_lea.vmem [#allocation8], %s2645_s4 }
  0x42   : > { %v890_v24 = vsel %vm882_vm15, 1, %v3376_v0  ;;  %vm3617_vm0 = vmand %vm531_vm12, %vm539_vm13  ;;  %443 = vmatpush.bf16.msra.mxu0 %v3012_v16  ;;  %vm5111_vm12 = vcmp.lt.s32.totalorder %v3607_v20, 8  ;;  %vm537_vm15 = vcmp.lt.s32.totalorder %v521_v22, 8  ;;  %v522_v37 = vadd.s32 4294967295, %v3595_v17  ;;  %s3095_s4 = sshll.u32 %s3445_s9, 6  ;;  %s2541_s20 = sshll.u32 %s5046_s25, 4  ;;  %s2542_s20 = int_to_ptr.vmem [resolvable:$true] %s2541_s20 }
  0x43   : > { %3098 = vmatpush.bf16.msra.mxu3 %v3012_v16  ;;  %899 = vperm.xlu1 %3194, %v890_v24   ;;  %vm571_vm4 = vmand %vm3617_vm0, %vm5107_vm5  ;;  %v3674_v38 = vand.u32 65535, %v482_v32  ;;  %v525_v42 = vadd.s32 4294967295, %v3665_v35  ;;  %v5210_v44 = vmov 0  ;;  %v3708_v47 = vshra.s32 %v483_v41, 16  ;;  %s2540_s10 = scalar_lea.hbm %s5105_s8, %s3095_s4  ;;  %s2529_s21 = scalar_lea.sflag [#allocation4], %s3520_s19 }
  0x44   : > { %vm587_vm11 = vmand %vm571_vm4, %vm5106_vm6  ;;  %vm540_vm6 = vcmp.lt.s32.totalorder %v524_v27, 8  ;;  %v3712_v48 = vand.u32 65535, %v483_v41  ;;  %v5216_v58 = vmov 0  ;;  %v369_v60 = vpack.c.bf16 %v362_v53, %v361_v52  ;;  %s2543_s9 = sshll.u32 %s2540_s10, 4  ;;  %s3318_s16 = scalar_lea.hbm %s5105_s8, 128  ;;  %s2544_s9 = int_to_ptr.hbm [resolvable:$true] %s2543_s9 }
  0x45   : > { %v595_v28 = vsel %vm587_vm11, 1, %v3376_v0  ;;  %vm3636_vm13 = vmand %vm851_vm1, %vm859_vm3  ;;  %vm532_vm11 = vcmp.ge.s32.totalorder %v524_v27, 0  ;;  %v3699_v45 = vadd.s32 4294967295, %v3674_v38  ;;  %v526_v54 = vadd.s32 4294967295, %v3708_v47  ;;  %s3312_s22 = sshra.s32 %s2544_s9, 4  ;;  %s3313_s22 = int_to_ptr.hbm [resolvable:$true] %s3312_s22 }
  0x46   : > { %v5205_v29 = vsel %vm3636_vm13, 4294967295, %v5204_v29  ;;  %608 = vperm.xlu2 %3196, %v595_v28   ;;  %444 = vmatpush.bf16.msra.mxu0 %v3011_v26  ;;  %vm875_vm4 = vmand %vm3636_vm13, %vm5108_vm8  ;;  %vm5112_vm8 = vcmp.ge.s32.totalorder %v3641_v30, 0  ;;  %v3745_v59 = vadd.s32 4294967295, %v3712_v48  ;;  %v371_v61 = vpack.c.bf16 %v366_v56, %v365_v55  ;;  %s3314_s17 = scalar_lea.hbm %s3313_s22, 64  ;;  %p3319_p11 = scmp.lt.s32.totalorder %s3313_s22, %s5105_s8 }
  0x47   : > { %3099 = vmatpush.bf16.msra.mxu3 %v3011_v26  ;;  %vm883_vm1 = vmand %vm875_vm4, %vm5111_vm12  ;;  %vm541_vm12 = vcmp.lt.s32.totalorder %v525_v42, 8  ;;  %v5219_v63 = vmov 0  ;;  %vm542_vm2 = vcmp.lt.s32.totalorder %v526_v54, 8  ;;  %v5222_v5 = vmov 0  ;;  %p3315_p1 = scmp.ne.s32.totalorder %s3313_s22, %s3314_s17  ;;  %p3320_p2 = scmp.lt.s32.totalorder %s3318_s16, %s3314_s17 }
  0x48   : > { %v891_v33 = vsel %vm883_vm1, 1, %v3376_v0  ;;  %vm3656_vm3 = vmand %vm529_vm14, %vm537_vm15  ;;  %vm5113_vm1 = vcmp.lt.s32.totalorder %v3641_v30, 8  ;;  %vm861_vm15 = vcmp.lt.s32.totalorder %v3609_v21, 8  ;;  %v3780_v6 = vshra.s32 %v484_v1, 16 }
  0x49   : > { %vm569_vm5 = vmand %vm3656_vm3, %vm5110_vm9  ;;  %vm538_vm9 = vcmp.lt.s32.totalorder %v522_v37, 8  ;;  %v3784_v10 = vand.u32 65535, %v484_v1  ;;  %v5224_v15 = vmov 0  ;;  %v3793_v16 = vadd.s32 1, %v3557_v8  ;;  %p3316_p4 = pnand %p3315_p1, %p3490_p3  ;;  %p3321_p9 = por %p3320_p2, %p3319_p11 }
  0x4a   : > { %vm585_vm4 = vmand %vm569_vm5, %vm5109_vm10  ;;  %445 = vmatpush.bf16.msra.mxu0 %v3010_v31  ;;  %vm853_vm5 = vcmp.ge.s32.totalorder %v3609_v21, 0  ;;  %v527_v22 = vadd.s32 4294967295, %v3780_v6  ;;  %v3816_v27 = vshra.s32 %v485_v19, 16  ;;  %v3821_v28 = vand.u32 65535, %v485_v19 }
  0x4b   : > { %902 = vperm.xlu1 %3194, %v891_v33   ;;  %v593_v39 = vsel %vm585_vm4, 1, %v3376_v0  ;;  %vm3677_vm14 = vmand %vm532_vm11, %vm540_vm6  ;;  %3100 = vmatpush.bf16.msra.mxu3 %v3010_v31  ;;  %vm530_vm4 = vcmp.ge.s32.totalorder %v522_v37, 0  ;;  %v3814_v26 = vadd.s32 4294967295, %v3784_v10  ;;  %v3830_v32 = vadd.s32 1, %v3597_v18  ;;  %v363_v33 = vld [vmem:[%s3526_s18 + $0x10] sm:$0xff]  ;;  %p3317_p8 = pneg %p3316_p4 }
  0x4c   : > { %602 = vperm.xlu0 %3195, %v593_v39   ;;  %vm572_vm10 = vmand %vm3677_vm14, %vm5112_vm8  ;;  %v367_v37 = vld [vmem:[%s3526_s18 + $0x30] sm:$0xff]  ;;  %v368_v39 = vld [vmem:[%s3526_s18 + $0x38] sm:$0xff]  ;;  %v5232_v55 = vmov 0  ;;  %v3898_v56 = vadd.s32 1, %v3547_v4  ;;  %v1090_v25 = vadd.s32 1, %v3555_v7  ;;  %v1091_v40 = vadd.s32 1, %v3595_v17 }
  0x4d   : > { %vm588_vm6 = vmand %vm572_vm10, %vm5113_vm1  ;;  %v372_v34 = vpack.c.bf16 %v368_v39, %v367_v37  ;;  %v1092_v37 = vadd.s32 1, %v3545_v3  ;;  %v5255_v39 = vmov 0  ;;  %p3322_p10 = pnand %p3321_p9, %p3317_p8 }
  0x4e   : > { %v596_v43 = vsel %vm588_vm6, 1, %v3376_v0  ;;  %446 = vmatpush.bf16.msra.mxu0 %v3009_v36  ;;  %vm3694_vm11 = vmand %vm853_vm5, %vm861_vm15  ;;  %vm533_vm6 = vcmp.ge.s32.totalorder %v525_v42, 0  ;;  %v528_v42 = vadd.s32 4294967295, %v3816_v27 }
  0x4f   : > { %v5211_v44 = vsel %vm3694_vm11, 4294967295, %v5210_v44  ;;  %611 = vperm.xlu2 %3196, %v596_v43   ;;  %3101 = vmatpush.bf16.msra.mxu3 %v3009_v36  ;;  %vm877_vm10 = vmand %vm3694_vm11, %vm5112_vm8  ;;  %vm5214_vm8 = vcmp.ge.s32.totalorder %v3607_v20, 0  ;;  %vm862_vm11 = vcmp.lt.s32.totalorder %v3665_v35, 8  ;;  %v364_v36 = vld [vmem:[%s3526_s18 + $0x18] sm:$0xff]  ;;  %v3849_v43 = vadd.s32 4294967295, %v3821_v28 }
  0x50   : > { %vm885_vm5 = vmand %vm877_vm10, %vm5113_vm1  ;;  %vm854_vm1 = vcmp.ge.s32.totalorder %v3665_v35, 0 }
  0x51   : > { %v893_v49 = vsel %vm885_vm5, 1, %v3376_v0  ;;  %vm3715_vm15 = vmand %vm530_vm4, %vm538_vm9  ;;  %vm5215_vm9 = vcmp.lt.s32.totalorder %v3607_v20, 8  ;;  %vm5122_vm5 = vcmp.lt.s32.totalorder %v3699_v45, 8 }
  0x52   : > { %vm570_vm10 = vmand %vm3715_vm15, %vm5214_vm8  ;;  %447 = vmatpush.bf16.msra.mxu0 %v3008_v46 }
  0x53   : > { %908 = vperm.xlu1 %3194, %v893_v49   ;;  %vm586_vm4 = vmand %vm570_vm10, %vm5215_vm9  ;;  %3102 = vmatpush.bf16.msra.mxu3 %v3008_v46  ;;  %vm5218_vm10 = vcmp.ge.s32.totalorder %v3699_v45, 0  ;;  %v370_v46 = vpack.c.bf16 %v364_v36, %v363_v33 }
  0x54   : > { %v594_v57 = vsel %vm586_vm4, 1, %v3376_v0  ;;  %vm3738_vm8 = vmand %vm533_vm6, %vm541_vm12  ;;  %vm534_vm4 = vcmp.ge.s32.totalorder %v526_v54, 0 }
  0x55   : > { %v5217_v58 = vsel %vm3738_vm8, 4294967295, %v5216_v58  ;;  %605 = vperm.xlu0 %3195, %v594_v57   ;;  %vm573_vm9 = vmand %vm3738_vm8, %vm5218_vm10  ;;  %vm5123_vm8 = vcmp.ge.s32.totalorder %v3745_v59, 0 }
  0x56   : > { %vm589_vm12 = vmand %vm573_vm9, %vm5122_vm5  ;;  %448 = vmatpush.bf16.msra.mxu0 %v3007_v51 }
  0x57   : > { %v597_v62 = vsel %vm589_vm12, 1, %v3376_v0  ;;  %3103 = vmatpush.bf16.msra.mxu3 %v3007_v51  ;;  %vm3754_vm6 = vmand %vm854_vm1, %vm862_vm11  ;;  %vm5124_vm11 = vcmp.lt.s32.totalorder %v3745_v59, 8  ;;  %vm863_vm12 = vcmp.lt.s32.totalorder %v3708_v47, 8  ;;  %v5228_v51 = vmov 0 }
  0x58   : > { %v5220_v63 = vsel %vm3754_vm6, 4294967295, %v5219_v63  ;;  %614 = vperm.xlu2 %3196, %v597_v62   ;;  %vm5221_vm7 = vmmov %vm5218_vm10 }
  0x59   : > { %vm878_vm10 = vmand %vm3754_vm6, %vm5221_vm7  ;;  %449 = vmatmul.bf16.vlgmr.msra.gmra.mxu0 %v369_v60  ;;  %vm855_vm7 = vcmp.ge.s32.totalorder %v3708_v47, 0  ;;  %v5234_v60 = vmov 0 }
  0x5a   : > { %vm886_vm1 = vmand %vm878_vm10, %vm5122_vm5  ;;  %459 = vmatmul.bf16.vlgmr.msra.gmra.mxu3 %v371_v61  ;;  %v3917_v61 = vadd.s32 1, %v3614_v23 }
  0x5b   : > { %v894_v2 = vsel %vm886_vm1, 1, %v3376_v0  ;;  %vm3770_vm9 = vmand %vm534_vm4, %vm542_vm2  ;;  %vm5125_vm4 = vcmp.ge.s32.totalorder %v3597_v18, 0 }
  0x5c   : > { %v5223_v5 = vsel %vm3770_vm9, 4294967295, %v5222_v5  ;;  %911 = vperm.xlu1 %3194, %v894_v2   ;;  %vm574_vm10 = vmand %vm3770_vm9, %vm5123_vm8  ;;  %vm544_vm9 = vcmp.lt.s32.totalorder %v528_v42, 8 }
  0x5d   : > { %vm590_vm1 = vmand %vm574_vm10, %vm5124_vm11 }
  0x5e   : > { %v598_v11 = vsel %vm590_vm1, 1, %v3376_v0  ;;  %vm3787_vm2 = vmand %vm855_vm7, %vm863_vm12  ;;  %vm5126_vm7 = vcmp.lt.s32.totalorder %v3597_v18, 8  ;;  %vm5127_vm1 = vcmp.ge.s32.totalorder %v3557_v8, 0 }
  0x5f   : > { %v5225_v15 = vsel %vm3787_vm2, 4294967295, %v5224_v15  ;;  %617 = vperm.xlu0 %3195, %v598_v11   ;;  %vm879_vm10 = vmand %vm3787_vm2, %vm5123_vm8  ;;  %vm5132_vm8 = vcmp.lt.s32.totalorder %v3557_v8, 8  ;;  %vm5227_vm2 = vcmp.lt.s32.totalorder %v3793_v16, 8 }
  0x60   : > { %vm887_vm12 = vmand %vm879_vm10, %vm5124_vm11 }
  0x61   : > { %v895_v24 = vsel %vm887_vm12, 1, %v3376_v0  ;;  %vm658_vm5 = vmand %vm3715_vm15, %vm5125_vm4  ;;  %vm543_vm12 = vcmp.lt.s32.totalorder %v527_v22, 8  ;;  %vm5135_vm4 = vcmp.ge.s32.totalorder %v3814_v26, 0 }
  0x62   : > { %914 = vperm.xlu2 %3196, %v895_v24   ;;  %vm674_vm10 = vmand %vm658_vm5, %vm5126_vm7  ;;  %vm535_vm7 = vcmp.ge.s32.totalorder %v527_v22, 0  ;;  %v5243_v22 = vmov 0  ;;  %v3986_v24 = vadd.s32 1, %v3712_v48 }
  0x63   : > { %v682_v31 = vsel %vm674_vm10, 1, %v3376_v0  ;;  %vm657_vm11 = vmand %vm3656_vm3, %vm5127_vm1  ;;  %vm5226_vm10 = vcmp.ge.s32.totalorder %v3793_v16, 0 }
  0x64   : > { %693 = vperm.xlu1 %3194, %v682_v31   ;;  %vm673_vm5 = vmand %vm657_vm11, %vm5132_vm8  ;;  %vm5139_vm11 = vcmp.lt.s32.totalorder %v3814_v26, 8  ;;  %vm536_vm8 = vcmp.ge.s32.totalorder %v528_v42, 0  ;;  %v5248_v31 = vmov 0 }
  0x65   : > { %v681_v41 = vsel %vm673_vm5, 1, %v3376_v0  ;;  %vm770_vm1 = vmand %vm3656_vm3, %vm5226_vm10  ;;  %vm5136_vm3 = vcmp.ge.s32.totalorder %v3830_v32, 0 }
  0x66   : > { %vm786_vm6 = vmand %vm770_vm1, %vm5227_vm2  ;;  %vm5137_vm1 = vcmp.lt.s32.totalorder %v3830_v32, 8 }
  0x67   : > { %690 = vperm.xlu0 %3195, %v681_v41   ;;  %v794_v49 = vsel %vm786_vm6, 1, %v3376_v0  ;;  %vm3852_vm5 = vmand %vm535_vm7, %vm543_vm12  ;;  %vm5138_vm7 = vcmp.ge.s32.totalorder %v3849_v43, 0  ;;  %v5262_v41 = vmov 0 }
  0x68   : > { %v5229_v51 = vsel %vm3852_vm5, 4294967295, %v5228_v51  ;;  %vm575_vm2 = vmand %vm3852_vm5, %vm5135_vm4  ;;  %vm5142_vm4 = vcmp.lt.s32.totalorder %v3849_v43, 8 }
  0x69   : > { %vm591_vm10 = vmand %vm575_vm2, %vm5139_vm11  ;;  %454 = vmatmul.bf16.gmra.mxu0 %v370_v46  ;;  %vm5148_vm11 = vcmp.lt.s32.totalorder %v3547_v4, 8  ;;  %v4070_v46 = vadd.s32 1, %v3784_v10 }
  0x6a   : > { %803 = vperm.xlu2 %3196, %v794_v49   ;;  %v599_v52 = vsel %vm591_vm10, 1, %v3376_v0  ;;  %vm771_vm6 = vmand %vm3715_vm15, %vm5136_vm3  ;;  %464 = vmatmul.bf16.gmra.mxu3 %v372_v34  ;;  %vm857_vm10 = vcmp.ge.s32.totalorder %v3816_v27, 0  ;;  %vm865_vm15 = vcmp.lt.s32.totalorder %v3816_v27, 8  ;;  %v4089_v34 = vadd.s32 1, %v3821_v28 }
  0x6b   : > { %vm787_vm12 = vmand %vm771_vm6, %vm5137_vm1 }
  0x6c   : > { %620 = vperm.xlu1 %3194, %v599_v52   ;;  %v795_v53 = vsel %vm787_vm12, 1, %v3376_v0  ;;  %vm3874_vm2 = vmand %vm536_vm8, %vm544_vm9  ;;  %vm856_vm8 = vcmp.ge.s32.totalorder %v3780_v6, 0  ;;  %vm864_vm9 = vcmp.lt.s32.totalorder %v3780_v6, 8 }
  0x6d   : > { %vm576_vm3 = vmand %vm3874_vm2, %vm5138_vm7 }
  0x6e   : > { %vm592_vm6 = vmand %vm576_vm3, %vm5142_vm4 }
  0x6f   : > { %806 = vperm.xlu0 %3195, %v795_v53   ;;  %v600_v50 = vsel %vm592_vm6, 1, %v3376_v0  ;;  %vm3887_vm12 = vmand %vm857_vm10, %vm865_vm15  ;;  %vm5143_vm15 = vcmp.ge.s32.totalorder %v3547_v4, 0  ;;  %vm5236_vm6 = vcmp.ge.s32.totalorder %v3814_v26, 0 }
  0x70   : > { %v5233_v55 = vsel %vm3887_vm12, 4294967295, %v5232_v55  ;;  %vm881_vm1 = vmand %vm3887_vm12, %vm5138_vm7  ;;  %vm5237_vm12 = vcmp.lt.s32.totalorder %v3814_v26, 8 }
  0x71   : > { %vm889_vm3 = vmand %vm881_vm1, %vm5142_vm4  ;;  %vm5145_vm4 = vcmp.ge.s32.totalorder %v3898_v56, 0 }
  0x72   : > { %623 = vperm.xlu2 %3196, %v600_v50   ;;  %v897_v57 = vsel %vm889_vm3, 1, %v3376_v0  ;;  %vm3903_vm10 = vmand %vm856_vm8, %vm864_vm9  ;;  %vm5144_vm9 = vcmp.lt.s32.totalorder %v3898_v56, 8 }
  0x73   : > { %v5235_v60 = vsel %vm3903_vm10, 4294967295, %v5234_v60  ;;  %vm880_vm7 = vmand %vm3903_vm10, %vm5236_vm6  ;;  %vm5147_vm6 = vcmp.ge.s32.totalorder %v3614_v23, 0 }
  0x74   : > { %920 = vperm.xlu1 %3194, %v897_v57   ;;  %vm888_vm1 = vmand %vm880_vm7, %vm5237_vm12  ;;  %vm5146_vm12 = vcmp.lt.s32.totalorder %v3614_v23, 8 }
  0x75   : > { %v896_v62 = vsel %vm888_vm1, 1, %v3376_v0  ;;  %vm659_vm8 = vmand %vm3617_vm0, %vm5143_vm15  ;;  %vm5149_vm15 = vcmp.ge.s32.totalorder %v3917_v61, 0 }
  0x76   : > { %vm675_vm3 = vmand %vm659_vm8, %vm5148_vm11  ;;  %vm1106_vm11 = vcmp.lt.s32.totalorder %v1090_v25, 8 }
  0x77   : > { %917 = vperm.xlu0 %3195, %v896_v62   ;;  %v683_v1 = vsel %vm675_vm3, 1, %v3376_v0  ;;  %vm772_vm7 = vmand %vm3617_vm0, %vm5145_vm4  ;;  %vm5150_vm3 = vcmp.lt.s32.totalorder %v3917_v61, 8  ;;  %v5271_v62 = vmov 0 }
  0x78   : > { %vm788_vm1 = vmand %vm772_vm7, %vm5144_vm9  ;;  %vm5238_vm9 = vcmp.ge.s32.totalorder %v3597_v18, 0 }
  0x79   : > { %v796_v2 = vsel %vm788_vm1, 1, %v3376_v0  ;;  %vm660_vm8 = vmand %vm3677_vm14, %vm5147_vm6  ;;  %vm1098_vm6 = vcmp.ge.s32.totalorder %v1090_v25, 0 }
  0x7a   : > { %696 = vperm.xlu2 %3196, %v683_v1   ;;  %vm676_vm0 = vmand %vm660_vm8, %vm5146_vm12  ;;  %vm5239_vm8 = vcmp.lt.s32.totalorder %v3597_v18, 8  ;;  %v5276_v1 = vmov 0 }
  0x7b   : > { %vm773_vm7 = vmand %vm3677_vm14, %vm5149_vm15  ;;  %v684_v11 = vsel %vm676_vm0, 1, %v3376_v0  ;;  %vm5240_vm14 = vcmp.ge.s32.totalorder %v3557_v8, 0  ;;  %vm5241_vm0 = vnez %v5201_v14 }
  0x7c   : > { %809 = vperm.xlu1 %3194, %v796_v2   ;;  %vm789_vm1 = vmand %vm773_vm7, %vm5150_vm3  ;;  %vm5242_vm7 = vcmp.lt.s32.totalorder %v3557_v8, 8  ;;  %v3996_v8 = vadd.s32 1, %v3674_v38 }
  0x7d   : > { %vm947_vm4 = vmand %vm3636_vm13, %vm5238_vm9  ;;  %v797_v7 = vsel %vm789_vm1, 1, %v3376_v0 }
  0x7e   : > { %vm955_vm12 = vmand %vm947_vm4, %vm5239_vm8  ;;  %vm5154_vm4 = vcmp.ge.s32.totalorder %v3674_v38, 0 }
  0x7f   : > { %699 = vperm.xlu0 %3195, %v684_v11   ;;  %vm946_vm15 = vmand %vm5241_vm0, %vm5240_vm14  ;;  %v963_v19 = vsel %vm955_vm12, 1, %v3376_v0  ;;  %vm1100_vm0 = vcmp.ge.s32.totalorder %v1092_v37, 0 }
  0x80   : > { %vm954_vm3 = vmand %vm946_vm15, %vm5242_vm7  ;;  %vm1099_vm15 = vcmp.ge.s32.totalorder %v1091_v40, 0 }
  0x81   : > { %vm3968_vm9 = vmand %vm1098_vm6, %vm1106_vm11  ;;  %v962_v17 = vsel %vm954_vm3, 1, %v3376_v0  ;;  %vm5247_vm11 = vnez %v5217_v58  ;;  %vm5250_vm3 = vcmp.ge.s32.totalorder %v3597_v18, 0 }
  0x82   : > { %v5244_v22 = vsel %vm3968_vm9, 4294967295, %v5243_v22  ;;  %812 = vperm.xlu2 %3196, %v797_v7   ;;  %vm5245_vm1 = vmmov %vm5240_vm14  ;;  %vm5155_vm14 = vcmp.lt.s32.totalorder %v3674_v38, 8 }
  0x83   : > { %vm1194_vm8 = vmand %vm3968_vm9, %vm5245_vm1  ;;  %vm5162_vm9 = vcmp.lt.s32.totalorder %v3712_v48, 8 }
  0x84   : > { %vm5246_vm10 = vmmov %vm5242_vm7  ;;  %vm1107_vm7 = vcmp.lt.s32.totalorder %v1091_v40, 8  ;;  %974 = vperm.xlu1 %3194, %v963_v19   ;;  %v1096_v19 = vadd.s32 1, %v3780_v6 }
  0x85   : > { %vm1202_vm13 = vmand %vm1194_vm8, %vm5246_vm10  ;;  %vm5158_vm10 = vcmp.ge.s32.totalorder %v3712_v48, 0 }
  0x86   : > { %vm661_vm6 = vmand %vm5247_vm11, %vm5154_vm4  ;;  %v1210_v33 = vsel %vm1202_vm13, 1, %v3376_v0  ;;  %vm5251_vm4 = vcmp.lt.s32.totalorder %v3597_v18, 8  ;;  %vm5165_vm13 = vcmp.ge.s32.totalorder %v3996_v8, 0 }
  0x87   : > { %vm677_vm12 = vmand %vm661_vm6, %vm5155_vm14  ;;  %971 = vperm.xlu0 %3195, %v962_v17  }
  0x88   : > { %vm3990_vm1 = vmand %vm1099_vm15, %vm1107_vm7  ;;  %vm5161_vm15 = vcmp.ge.s32.totalorder %v3986_v24, 0  ;;  %v685_v36 = vsel %vm677_vm12, 1, %v3376_v0  ;;  %vm5252_vm7 = vnez %v5223_v5  ;;  %v1093_v5 = vadd.s32 1, %v3609_v21 }
  0x89   : > { %v5249_v31 = vsel %vm3990_vm1, 4294967295, %v5248_v31  ;;  %vm1195_vm8 = vmand %vm3990_vm1, %vm5250_vm3  ;;  %vm5164_vm3 = vcmp.lt.s32.totalorder %v3986_v24, 8 }
  0x8a   : > { %vm1203_vm6 = vmand %vm1195_vm8, %vm5251_vm4  ;;  %1219 = vperm.xlu2 %3196, %v1210_v33   ;;  %vm5163_vm8 = vcmp.lt.s32.totalorder %v3996_v8, 8 }
  0x8b   : > { %vm662_vm14 = vmand %vm5252_vm7, %vm5158_vm10  ;;  %v1211_v18 = vsel %vm1203_vm6, 1, %v3376_v0 }
  0x8c   : > { %vm775_vm4 = vmand %vm5252_vm7, %vm5161_vm15  ;;  %702 = vperm.xlu1 %3194, %v685_v36   ;;  %vm1108_vm7 = vcmp.lt.s32.totalorder %v1092_v37, 8  ;;  %vm5254_vm15 = vnez %v5199_v12 }
  0x8d   : > { %vm678_vm12 = vmand %vm662_vm14, %vm5162_vm9  ;;  %vm5253_vm14 = vcmp.ge.s32.totalorder %v3547_v4, 0 }
  0x8e   : > { %vm774_vm10 = vmand %vm5247_vm11, %vm5165_vm13  ;;  %v686_v3 = vsel %vm678_vm12, 1, %v3376_v0  ;;  %vm1109_vm13 = vcmp.lt.s32.totalorder %v1093_v5, 8 }
  0x8f   : > { %vm791_vm1 = vmand %vm775_vm4, %vm5164_vm3  ;;  %1222 = vperm.xlu0 %3195, %v1211_v18   ;;  %vm1101_vm3 = vcmp.ge.s32.totalorder %v1093_v5, 0 }
  0x90   : > { %vm790_vm6 = vmand %vm774_vm10, %vm5163_vm8  ;;  %v799_v58 = vsel %vm791_vm1, 1, %v3376_v0  ;;  %vm5258_vm10 = vcmp.lt.s32.totalorder %v3547_v4, 8 }
  0x91   : > { %vm948_vm9 = vmand %vm5254_vm15, %vm5253_vm14  ;;  %v798_v21 = vsel %vm790_vm6, 1, %v3376_v0  ;;  %vm5168_vm6 = vcmp.ge.s32.totalorder %v3821_v28, 0 }
  0x92   : > { %vm4038_vm11 = vmand %vm1100_vm0, %vm1108_vm7  ;;  %705 = vperm.xlu2 %3196, %v686_v3   ;;  %vm5260_vm7 = vcmp.ge.s32.totalorder %v3614_v23, 0 }
  0x93   : > { %v5256_v39 = vsel %vm4038_vm11, 4294967295, %v5255_v39  ;;  %vm5257_vm4 = vmmov %vm5253_vm14  ;;  %vm5261_vm14 = vnez %v5211_v44 }
  0x94   : > { %vm1196_vm12 = vmand %vm4038_vm11, %vm5257_vm4  ;;  %818 = vperm.xlu1 %3194, %v799_v58   ;;  %vm5270_vm11 = vcmp.lt.s32.totalorder %v3674_v38, 8 }
  0x95   : > { %vm956_vm8 = vmand %vm948_vm9, %vm5258_vm10  ;;  %vm5264_vm9 = vcmp.lt.s32.totalorder %v3614_v23, 8  ;;  %v1095_v23 = vadd.s32 1, %v3708_v47 }
  0x96   : > { %vm5259_vm1 = vmmov %vm5258_vm10  ;;  %v964_v42 = vsel %vm956_vm8, 1, %v3376_v0 }
  0x97   : > { %vm1204_vm0 = vmand %vm1196_vm12, %vm5259_vm1  ;;  %815 = vperm.xlu0 %3195, %v798_v21   ;;  %v3030_v21 = vld [vmem:[#allocation5 + $0x78] sm:$0xff] }
  0x98   : > { %vm949_vm15 = vmand %vm5261_vm14, %vm5260_vm7  ;;  %v1212_v4 = vsel %vm1204_vm0, 1, %v3376_v0  ;;  %vm5267_vm0 = vnez %v5229_v51  ;;  %v1094_v51 = vadd.s32 1, %v3665_v35  ;;  %2163 = vmatpush.bf16.msra.mxu2 %v3030_v21 }
  0x99   : > { %vm4055_vm5 = vmand %vm1101_vm3, %vm1109_vm13  ;;  %vm5170_vm13 = vcmp.ge.s32.totalorder %v3784_v10, 0  ;;  %vm5171_vm3 = vcmp.lt.s32.totalorder %v3821_v28, 8 }
  0x9a   : > { %v5263_v41 = vsel %vm4055_vm5, 4294967295, %v5262_v41  ;;  %vm957_vm4 = vmand %vm949_vm15, %vm5264_vm9  ;;  %977 = vperm.xlu2 %3196, %v964_v42  }
  0x9b   : > { %vm5265_vm12 = vmmov %vm5260_vm7  ;;  %v965_v49 = vsel %vm957_vm4, 1, %v3376_v0 }
  0x9c   : > { %vm1197_vm10 = vmand %vm4055_vm5, %vm5265_vm12  ;;  %1225 = vperm.xlu1 %3194, %v1212_v4   ;;  %v3046_v4 = vld [vmem:[#allocation5 + $0xf8] sm:$0xff] }
  0x9d   : > { %vm664_vm15 = vmand %vm3874_vm2, %vm5168_vm6  ;;  %vm5172_vm6 = vcmp.ge.s32.totalorder %v4070_v46, 0  ;;  %2221 = vmatpush.bf16.msrb.mxu0 %v3046_v4  ;;  %v3018_v4 = vld [vmem:[#allocation5 + $0x18] sm:$0xff] }
  0x9e   : > { %vm5266_vm8 = vmmov %vm5264_vm9  ;;  %vm5169_vm9 = vcmp.lt.s32.totalorder %v3784_v10, 8 }
  0x9f   : > { %vm1205_vm1 = vmand %vm1197_vm10, %vm5266_vm8  ;;  %980 = vperm.xlu0 %3195, %v965_v49   ;;  %vm5176_vm8 = vcmp.ge.s32.totalorder %v4089_v34, 0  ;;  %v3022_v49 = vld [vmem:[#allocation5 + $0x38] sm:$0xff] }
  0xa0   : > { %vm663_vm7 = vmand %vm5267_vm0, %vm5170_vm13  ;;  %v1213_v52 = vsel %vm1205_vm1, 1, %v3376_v0  ;;  %v4095_v53 = vpop.permute.xlu2 %608  ;;  %vm5268_vm1 = vcmp.ge.s32.totalorder %v3674_v38, 0  ;;  %vm1103_vm13 = vcmp.ge.s32.totalorder %v1095_v23, 0  ;;  %2134 = vmatpush.bf16.msra.mxu1 %v3022_v49  ;;  %v3034_v49 = vld [vmem:[#allocation5 + $0x98] sm:$0xff] }
  0xa1   : > { %vm680_vm12 = vmand %vm664_vm15, %vm5171_vm3  ;;  %vm5175_vm15 = vcmp.lt.s32.totalorder %v4070_v46, 8  ;;  %vm1111_vm3 = vcmp.lt.s32.totalorder %v1095_v23, 8  ;;  %v3029_v23 = vld [vmem:[#allocation5 + $0x70] sm:$0xff] }
  0xa2   : > { %vm679_vm4 = vmand %vm663_vm7, %vm5169_vm9  ;;  %v688_v50 = vsel %vm680_vm12, 1, %v3376_v0  ;;  %1228 = vperm.xlu2 %3196, %v1213_v52   ;;  %vm5269_vm7 = vnez %v5220_v63  ;;  %v3038_v52 = vld [vmem:[#allocation5 + $0xb8] sm:$0xff]  ;;  %2164 = vmatpush.bf16.msra.mxu2 %v3029_v23 }
  0xa3   : > { %vm776_vm10 = vmand %vm5267_vm0, %vm5172_vm6  ;;  %v687_v47 = vsel %vm679_vm4, 1, %v3376_v0  ;;  %vm5179_vm6 = vcmp.lt.s32.totalorder %v4089_v34, 8  ;;  %2192 = vmatpush.bf16.msrb.mxu3 %v3038_v52 }
  0xa4   : > { %vm950_vm9 = vmand %vm5269_vm7, %vm5268_vm1  ;;  %711 = vperm.xlu1 %3194, %v688_v50   ;;  %vm1110_vm7 = vcmp.lt.s32.totalorder %v1094_v51, 8 }
  0xa5   : > { %vm792_vm12 = vmand %vm776_vm10, %vm5175_vm15  ;;  %vm1102_vm15 = vcmp.ge.s32.totalorder %v1094_v51, 0  ;;  %v3021_v51 = vld [vmem:[#allocation5 + $0x30] sm:$0xff] }
  0xa6   : > { %vm777_vm0 = vmand %vm3874_vm2, %vm5176_vm8  ;;  %v800_v57 = vsel %vm792_vm12, 1, %v3376_v0  ;;  %vm5273_vm2 = vcmp.ge.s32.totalorder %v3712_v48, 0  ;;  %vm5274_vm8 = vnez %v5225_v15  ;;  %2135 = vmatpush.bf16.msra.mxu1 %v3021_v51 }
  0xa7   : > { %vm958_vm1 = vmand %vm950_vm9, %vm5270_vm11  ;;  %708 = vperm.xlu0 %3195, %v687_v47   ;;  %vm5278_vm9 = vcmp.lt.s32.totalorder %v3712_v48, 8  ;;  %v3045_v47 = vld [vmem:[#allocation5 + $0xf0] sm:$0xff] }
  0xa8   : > { %vm4120_vm4 = vmand %vm1103_vm13, %vm1111_vm3  ;;  %v966_v35 = vsel %vm958_vm1, 1, %v3376_v0  ;;  %2222 = vmatpush.bf16.msrb.mxu0 %v3045_v47 }
  0xa9   : > { %v5272_v62 = vsel %vm4120_vm4, 4294967295, %v5271_v62  ;;  %vm793_vm10 = vmand %vm777_vm0, %vm5179_vm6  ;;  %v4131_v54 = vpop.permute.xlu2 %611 }
  0xaa   : > { %vm951_vm5 = vmand %vm5274_vm8, %vm5273_vm2  ;;  %821 = vperm.xlu2 %3196, %v800_v57   ;;  %v801_v2 = vsel %vm793_vm10, 1, %v3376_v0 }
  0xab   : > { %vm5275_vm11 = vmmov %vm5273_vm2  ;;  %vm5280_vm2 = vcmp.ge.s32.totalorder %v3674_v38, 0 }
  0xac   : > { %vm1199_vm13 = vmand %vm4120_vm4, %vm5275_vm11  ;;  %983 = vperm.xlu1 %3194, %v966_v35   ;;  %vm5294_vm4 = vnez %v5233_v55  ;;  %v3037_v35 = vld [vmem:[#allocation5 + $0xb0] sm:$0xff] }
  0xad   : > { %vm4137_vm3 = vmand %vm1102_vm15, %vm1110_vm7  ;;  %vm5281_vm15 = vcmp.ge.s32.totalorder %v3793_v16, 0  ;;  %vm5282_vm7 = vnez %v5201_v14  ;;  %2193 = vmatpush.bf16.msrb.mxu3 %v3037_v35 }
  0xae   : > { %v5277_v1 = vsel %vm4137_vm3, 4294967295, %v5276_v1  ;;  %vm959_vm12 = vmand %vm951_vm5, %vm5278_vm9  ;;  %vm5283_vm5 = vcmp.lt.s32.totalorder %v3674_v38, 8 }
  0xaf   : > { %vm5279_vm0 = vmmov %vm5278_vm9  ;;  %824 = vperm.xlu0 %3195, %v801_v2   ;;  %v967_v25 = vsel %vm959_vm12, 1, %v3376_v0  ;;  %vm5286_vm12 = vnez %v5244_v22  ;;  %v3028_v2 = vld [vmem:[#allocation5 + $0x68] sm:$0xff] }
  0xb0   : > { %vm1207_vm1 = vmand %vm1199_vm13, %vm5279_vm0  ;;  %vm5284_vm13 = vcmp.lt.s32.totalorder %v3793_v16, 8  ;;  %vm5285_vm0 = vcmp.ge.s32.totalorder %v3573_v13, 0  ;;  %2165 = vmatpush.bf16.msra.mxu2 %v3028_v2 }
  0xb1   : > { %vm1198_vm6 = vmand %vm4137_vm3, %vm5280_vm2  ;;  %v1215_v11 = vsel %vm1207_vm1, 1, %v3376_v0  ;;  %vm5288_vm1 = vnez %v5205_v29  ;;  %vm1104_vm3 = vcmp.ge.s32.totalorder %v1096_v19, 0 }
  0xb2   : > { %vm1018_vm11 = vmand %vm5282_vm7, %vm5281_vm15  ;;  %986 = vperm.xlu2 %3196, %v967_v25   ;;  %v4160_v48 = vpop.permute.xlu2 %614  ;;  %vm5287_vm15 = vcmp.ge.s32.totalorder %v3830_v32, 0 }
  0xb3   : > { %vm1206_vm10 = vmand %vm1198_vm6, %vm5283_vm5  ;;  %v4171_v38 = vpop.permute.xlu0 %905  ;;  %vm5289_vm6 = vcmp.lt.s32.totalorder %v3573_v13, 8  ;;  %vm5290_vm5 = vcmp.lt.s32.totalorder %v3830_v32, 8  ;;  %v1097_v13 = vadd.s32 1, %v3816_v27 }
  0xb4   : > { %vm1026_vm9 = vmand %vm1018_vm11, %vm5284_vm13  ;;  %1234 = vperm.xlu1 %3194, %v1215_v11   ;;  %v1214_v14 = vsel %vm1206_vm10, 1, %v3376_v0  ;;  %vm5291_vm10 = vcmp.ge.s32.totalorder %v3607_v20, 0 }
  0xb5   : > { %vm1122_vm2 = vmand %vm5286_vm12, %vm5285_vm0  ;;  %v4173_v7 = vpop.permute.xlu1 %899  ;;  %v1034_v40 = vsel %vm1026_vm9, 1, %v3376_v0  ;;  %vm5292_vm0 = vnez %v5249_v31  ;;  %vm5295_vm9 = vcmp.lt.s32.totalorder %v3607_v20, 8  ;;  %v4313_v31 = vld [vmem:[%s5100_s3] ss:$0 sm:$0xff] }
  0xb6   : > { %vm1019_vm7 = vmand %vm5288_vm1, %vm5287_vm15  ;;  %vm5293_vm1 = vcmp.ge.s32.totalorder %v3821_v28, 0 }
  0xb7   : > { %vm1130_vm11 = vmand %vm1122_vm2, %vm5289_vm6  ;;  %1231 = vperm.xlu0 %3195, %v1214_v14   ;;  %v3020_v14 = vld [vmem:[#allocation5 + $0x28] sm:$0xff] }
  0xb8   : > { %vm1027_vm13 = vmand %vm1019_vm7, %vm5290_vm5  ;;  %v1138_v29 = vsel %vm1130_vm11, 1, %v3376_v0  ;;  %vm1112_vm7 = vcmp.lt.s32.totalorder %v1096_v19, 8  ;;  %vm5296_vm11 = vcmp.lt.s32.totalorder %v3821_v28, 8  ;;  %v3027_v19 = vld [vmem:[#allocation5 + $0x60] sm:$0xff]  ;;  %2136 = vmatpush.bf16.msra.mxu1 %v3020_v14 }
  0xb9   : > { %vm1123_vm15 = vmand %vm5292_vm0, %vm5291_vm10  ;;  %v1035_v17 = vsel %vm1027_vm13, 1, %v3376_v0  ;;  %vm5297_vm10 = vcmp.ge.s32.totalorder %v3784_v10, 0  ;;  %vm1105_vm13 = vcmp.ge.s32.totalorder %v1097_v13, 0  ;;  %2166 = vmatpush.bf16.msra.mxu2 %v3027_v19 }
  0xba   : > { %vm953_vm2 = vmand %vm5294_vm4, %vm5293_vm1  ;;  %1043 = vperm.xlu2 %3196, %v1034_v40   ;;  %vm5298_vm1 = vnez %v5235_v60  ;;  %v3036_v40 = vld [vmem:[#allocation5 + $0xa8] sm:$0xff] }
  0xbb   : > { %vm1131_vm6 = vmand %vm1123_vm15, %vm5295_vm9  ;;  %vm1113_vm9 = vcmp.lt.s32.totalorder %v1097_v13, 8  ;;  %2194 = vmatpush.bf16.msrb.mxu3 %v3036_v40 }
  0xbc   : > { %v4193_v6 = vpop.permute.xlu2 %914  ;;  %1147 = vperm.xlu1 %3194, %v1138_v29   ;;  %vm961_vm5 = vmand %vm953_vm2, %vm5296_vm11  ;;  %v1139_v27 = vsel %vm1131_vm6, 1, %v3376_v0  ;;  %vm5301_vm2 = vcmp.lt.s32.totalorder %v3784_v10, 8  ;;  %vm5304_vm6 = vcmp.ge.s32.totalorder %v3898_v56, 0 }
  0xbd   : > { %vm952_vm4 = vmand %vm5298_vm1, %vm5297_vm10  ;;  %v4202_v33 = vpop.permute.xlu1 %902  ;;  %v969_v37 = vsel %vm961_vm5, 1, %v3376_v0  ;;  %vm5305_vm1 = vnez %v5199_v12 }
  0xbe   : > { %vm4204_vm15 = vmand %vm1104_vm3, %vm1112_vm7  ;;  %v4209_v36 = vpop.permute.xlu0 %602 }
  0xbf   : > { %1046 = vperm.xlu0 %3195, %v1035_v17   ;;  %vm960_vm11 = vmand %vm952_vm4, %vm5301_vm2  ;;  %v3043_v17 = vld [vmem:[#allocation5 + $0xe0] sm:$0xff] }
  0xc0   : > { %vm1200_vm3 = vmand %vm4204_vm15, %vm5297_vm10  ;;  %v968_v5 = vsel %vm960_vm11, 1, %v3376_v0 }
  0xc1   : > { %vm4218_vm7 = vmand %vm1105_vm13, %vm1113_vm9  ;;  %vm5308_vm9 = vcmp.lt.s32.totalorder %v3898_v56, 8 }
  0xc2   : > { %1150 = vperm.xlu2 %3196, %v1139_v27   ;;  %vm1020_vm8 = vmand %vm5305_vm1, %vm5304_vm6  ;;  %vm5309_vm1 = vcmp.lt.s32.totalorder %v3821_v28, 8 }
  0xc3   : > { %vm5306_vm4 = vmmov %vm5301_vm2  ;;  %vm5307_vm2 = vcmp.ge.s32.totalorder %v3821_v28, 0 }
  0xc4   : > { %v4226_v3 = vpop.permute.xlu2 %803  ;;  %992 = vperm.xlu1 %3194, %v969_v37   ;;  %vm1208_vm5 = vmand %vm1200_vm3, %vm5306_vm4  ;;  %vm5310_vm3 = vcmp.ge.s32.totalorder %v3917_v61, 0  ;;  %vm5312_vm4 = vnez %v5263_v41  ;;  %v3035_v37 = vld [vmem:[#allocation5 + $0xa0] sm:$0xff] }
  0xc5   : > { %vm1201_vm13 = vmand %vm4218_vm7, %vm5307_vm2  ;;  %v4235_v58 = vpop.permute.xlu1 %908  ;;  %v1216_v12 = vsel %vm1208_vm5, 1, %v3376_v0  ;;  %vm5313_vm2 = vcmp.lt.s32.totalorder %v3917_v61, 8  ;;  %2195 = vmatpush.bf16.msrb.mxu3 %v3035_v37  ;;  %v3032_v37 = vld [vmem:[#allocation5 + $0x88] sm:$0xff] }
  0xc6   : > { %vm1028_vm10 = vmand %vm1020_vm8, %vm5308_vm9  ;;  %vm5311_vm8 = vcmp.ge.s32.totalorder %v3641_v30, 0  ;;  %vm5315_vm9 = vnez %v5256_v39 }
  0xc7   : > { %989 = vperm.xlu0 %3195, %v968_v5   ;;  %v4240_v42 = vpop.permute.xlu0 %605  ;;  %vm1209_vm11 = vmand %vm1201_vm13, %vm5309_vm1  ;;  %v1036_v10 = vsel %vm1028_vm10, 1, %v3376_v0  ;;  %vm5316_vm1 = vcmp.lt.s32.totalorder %v3641_v30, 8  ;;  %v3026_v5 = vld [vmem:[#allocation5 + $0x58] sm:$0xff] }
  0xc8   : > { %vm1021_vm6 = vmand %vm5261_vm14, %vm5310_vm3  ;;  %v1217_v50 = vsel %vm1209_vm11, 1, %v3376_v0  ;;  %vm5314_vm14 = vcmp.ge.s32.totalorder %v3560_v9, 0  ;;  %vm5317_vm11 = vcmp.lt.s32.totalorder %v3560_v9, 8  ;;  %v3044_v9 = vld [vmem:[#allocation5 + $0xe8] sm:$0xff]  ;;  %2167 = vmatpush.bf16.msra.mxu2 %v3026_v5  ;;  %v3023_v5 = vld [vmem:[#allocation5 + $0x40] sm:$0xff] }
  0xc9   : > { %vm1125_vm5 = vmand %vm5312_vm4, %vm5311_vm8  ;;  %vm5320_vm8 = vcmp.ge.s32.totalorder %v3793_v16, 0  ;;  %2223 = vmatpush.bf16.msrb.mxu0 %v3044_v9  ;;  %2196 = vmatpush.bf16.msrb.mxu3 %v3034_v49  ;;  %v3024_v9 = vld [vmem:[#allocation5 + $0x48] sm:$0xff] }
  0xca   : > { %1237 = vperm.xlu2 %3196, %v1216_v12   ;;  %vm1029_vm13 = vmand %vm1021_vm6, %vm5313_vm2  ;;  %vm5321_vm2 = vcmp.ge.s32.totalorder %v3898_v56, 0 }
  0xcb   : > { %vm1124_vm10 = vmand %vm5315_vm9, %vm5314_vm14  ;;  %v1037_v57 = vsel %vm1029_vm13, 1, %v3376_v0 }
  0xcc   : > { %v4253_v28 = vpop.permute.xlu2 %623  ;;  %1049 = vperm.xlu1 %3194, %v1036_v10   ;;  %vm1133_vm3 = vmand %vm1125_vm5, %vm5316_vm1  ;;  %v3042_v10 = vld [vmem:[#allocation5 + $0xd8] sm:$0xff] }
  0xcd   : > { %vm4269_vm6 = vmand %vm1124_vm10, %vm5317_vm11  ;;  %v1141_v30 = vsel %vm1133_vm3, 1, %v3376_v0  ;;  %vm5323_vm10 = vcmp.lt.s32.totalorder %v3898_v56, 8  ;;  %vm5327_vm11 = vcmp.ge.s32.totalorder %v3917_v61, 0  ;;  %2224 = vmatpush.bf16.msrb.mxu0 %v3043_v17 }
  0xce   : > { %v4262_v44 = vpop.permute.xlu1 %911  ;;  %vm1266_vm5 = vmand %vm5286_vm12, %vm5320_vm8  ;;  %v1140_v22 = vsel %vm4269_vm6, 1, %v3376_v0  ;;  %vm5322_vm12 = vcmp.lt.s32.totalorder %v3793_v16, 8  ;;  %v3019_v16 = vld [vmem:[#allocation5 + $0x20] sm:$0xff] }
  0xcf   : > { %1240 = vperm.xlu0 %3195, %v1217_v50   ;;  %vm1268_vm13 = vmand %vm5315_vm9, %vm5321_vm2  ;;  %vm5326_vm9 = vcmp.ge.s32.totalorder %v3830_v32, 0  ;;  %2137 = vmatpush.bf16.msra.mxu1 %v3019_v16  ;;  %vm5332_vm2 = vcmp.ge.s32.totalorder %v3986_v24, 0  ;;  %v510_v50 = vlaneseq }
  0xd0   : > { %vm1274_vm14 = vmand %vm1266_vm5, %vm5322_vm12 }
  0xd1   : > { %v4273_v11 = vpop.permute.xlu0 %617  ;;  %vm4293_vm1 = vmand %vm1268_vm13, %vm5323_vm10  ;;  %v1282_v27 = vsel %vm1274_vm14, 1, %v3376_v0  ;;  %vm5333_vm13 = vnez %v5225_v15  ;;  %vm5334_vm14 = vcmp.ge.s32.totalorder %v3996_v8, 0  ;;  %vm5335_vm10 = vnez %v5220_v63  ;;  %2225 = vmatpush.bf16.msrb.mxu0 %v3042_v10  ;;  %v3017_v63 = vld [vmem:[#allocation5 + $0x10] sm:$0xff] }
  0xd2   : > { %1052 = vperm.xlu2 %3196, %v1037_v57   ;;  %vm1267_vm3 = vmand %vm5292_vm0, %vm5326_vm9  ;;  %v1284_v21 = vsel %vm4293_vm1, 1, %v3376_v0  ;;  %vm5328_vm0 = vcmp.lt.s32.totalorder %v3830_v32, 8  ;;  %v3025_v32 = vld [vmem:[#allocation5 + $0x50] sm:$0xff]  ;;  %vm5338_vm9 = vcmp.lt.s32.totalorder %v3986_v24, 8  ;;  %v4375_v39 = vshrl.u32 %v510_v50, 7  ;;  %v3031_v50 = vld [vmem:[#allocation5 + $0x80] sm:$0xff] }
  0xd3   : > { %vm1269_vm6 = vmand %vm5312_vm4, %vm5327_vm11  ;;  %vm5329_vm4 = vcmp.lt.s32.totalorder %v3917_v61, 8  ;;  %2138 = vmatpush.bf16.msra.mxu1 %v3018_v4  ;;  %2168 = vmatpush.bf16.msra.mxu2 %v3025_v32  ;;  %v3041_v57 = vld [vmem:[#allocation5 + $0xd0] sm:$0xff]  ;;  %vm5339_vm11 = vcmp.lt.s32.totalorder %v3996_v8, 8  ;;  %v3015_v61 = vld [vmem:[#allocation5] sm:$0xff] }
  0xd4   : > { %v4284_v29 = vpop.permute.xlu2 %696  ;;  %1156 = vperm.xlu1 %3194, %v1141_v30   ;;  %vm1275_vm8 = vmand %vm1267_vm3, %vm5328_vm0  ;;  %v3033_v30 = vld [vmem:[#allocation5 + $0x90] sm:$0xff]  ;;  %vm5342_vm0 = vcmp.ge.s32.totalorder %v3699_v45, 0 }
  0xd5   : > { %vm4322_vm5 = vmand %vm1269_vm6, %vm5329_vm4  ;;  %v1283_v23 = vsel %vm1275_vm8, 1, %v3376_v0  ;;  %vm5343_vm8 = vnez %v5277_v1  ;;  %2226 = vmatpush.bf16.msrb.mxu0 %v3041_v57  ;;  %2197 = vmatpush.bf16.msrb.mxu3 %v3033_v30 }
  0xd6   : > { %v4297_v13 = vpop.permute.xlu1 %693  ;;  %v450_v56 = vpop.f32.mrf.mxu0  ;;  %vm1023_vm12 = vmand %vm5333_vm13, %vm5332_vm2  ;;  %v1285_v35 = vsel %vm4322_vm5, 1, %v3376_v0  ;;  %vm5347_vm13 = vcmp.lt.s32.totalorder %v3699_v45, 8 }
  0xd7   : > { %1153 = vperm.xlu0 %3195, %v1140_v22   ;;  %vm4337_vm1 = vmand %vm5335_vm10, %vm5334_vm14  ;;  %v451_v15 = vadd.f32 %v4313_v31, %v450_v56  ;;  %2139 = vmatpush.bf16.msra.mxu1 %v3017_v63  ;;  %v3016_v56 = vld [vmem:[#allocation5 + $0x8] sm:$0xff]  ;;  %v3054_v22 = vld [vmem:[#allocation5 + $0x138] sm:$0xff] }
  0xd8   : > { %vm1031_vm3 = vmand %vm1023_vm12, %vm5338_vm9  ;;  %2169 = vmatpush.bf16.msra.mxu2 %v3024_v9  ;;  %vm5354_vm9 = vnez %v5272_v62 }
  0xd9   : > { %v4308_v12 = vpop.permute.xlu0 %690  ;;  %vm4355_vm6 = vmand %vm4337_vm1, %vm5339_vm11  ;;  %v1039_v19 = vsel %vm1031_vm3, 1, %v3376_v0  ;;  %v4377_v17 = vmax.f32 %v451_v15, 0.0  ;;  %vm5353_vm1 = vcmp.ge.s32.totalorder %v3745_v59, 0  ;;  %2198 = vmatpush.bf16.msrb.mxu3 %v3032_v37 }
  0xda   : > { %1291 = vperm.xlu2 %3196, %v1282_v27   ;;  %vm1126_vm4 = vmand %vm5343_vm8, %vm5342_vm0  ;;  %v3040_v27 = vld [vmem:[#allocation5 + $0xc8] sm:$0xff]  ;;  %v1038_v41 = vsel %vm4355_vm6, 1, %v3376_v0  ;;  %vm5357_vm6 = vcmp.ge.s32.totalorder %v3986_v24, 0 }
  0xdb   : > { %vm5344_vm5 = vmmov %vm5334_vm14  ;;  %2227 = vmatpush.bf16.msrb.mxu0 %v3040_v27  ;;  %v502_v45 = vrot.slane %v4377_v17, 7  ;;  %2140 = vmatpush.bf16.msra.mxu1 %v3016_v56 }
  0xdc   : > { %v4330_v52 = vpop.permute.xlu2 %812  ;;  %1297 = vperm.xlu1 %3194, %v1284_v21   ;;  %vm4371_vm2 = vmand %vm5343_vm8, %vm5344_vm5  ;;  %2170 = vmatpush.bf16.msra.mxu2 %v3023_v5  ;;  %vm5358_vm8 = vcmp.lt.s32.totalorder %v3745_v59, 8  ;;  %vm627_vm5 = vcmp.eq.s32.totalorder %v4095_v53, 1 }
  0xdd   : > { %v4344_v51 = vpop.f32.mrf.mxu3  ;;  %vm4383_vm12 = vmand %vm1126_vm4, %vm5347_vm13  ;;  %2199 = vmatpush.bf16.msrb.mxu3 %v3031_v50 }
  0xde   : > { %v4342_v47 = vpop.permute.xlu1 %620  ;;  %v452_v2 = vpop.f32.mrf.mxu0  ;;  %vm5350_vm14 = vmmov %vm5339_vm11  ;;  %vm512_vm11 = vcmp.lt.s32.totalorder %v4375_v39, 1  ;;  %v1142_v15 = vsel %vm4383_vm12, 1, %v3376_v0  ;;  %vm714_vm12 = vcmp.eq.s32.totalorder %v4297_v13, 1 }
  0xdf   : > { %1294 = vperm.xlu0 %3195, %v1283_v23   ;;  %v453_v14 = vadd.f32 %v4313_v31, %v452_v2  ;;  %vm4396_vm10 = vmand %vm4371_vm2, %vm5350_vm14  ;;  %v3039_v23 = vld [vmem:[#allocation5 + $0xc0] sm:$0xff]  ;;  %2141 = vmatpush.bf16.msra.mxu1 %v3015_v61  ;;  %vm5359_vm2 = vcmp.lt.s32.totalorder %v3986_v24, 8  ;;  %vm5362_vm14 = vcmp.ge.s32.totalorder %v4089_v34, 0 }
  0xe0   : > { %vm4406_vm3 = vmand %vm5354_vm9, %vm5353_vm1  ;;  %2228 = vmatpush.bf16.msrb.mxu0 %v3039_v23  ;;  %v1286_v25 = vsel %vm4396_vm10, 1, %v3376_v0  ;;  %vm5363_vm10 = vnez %v5233_v55  ;;  %v461_v23 = vadd.f32 %v4313_v31, %v4344_v51 }
  0xe1   : > { %v4364_v40 = vpop.permute.xlu0 %806  ;;  %v4379_v16 = vmax.f32 %v453_v14, 0.0  ;;  %vm1271_vm0 = vmand %vm5354_vm9, %vm5357_vm6  ;;  %vm5364_vm9 = vcmp.ge.s32.totalorder %v4070_v46, 0 }
  0xe2   : > { %1300 = vperm.xlu2 %3196, %v1285_v35   ;;  %vm1135_vm4 = vmand %vm4406_vm3, %vm5358_vm8  ;;  %vm5365_vm3 = vnez %v5235_v60  ;;  %vm5366_vm8 = vcmp.lt.s32.totalorder %v4089_v34, 8 }
  0xe3   : > { %v503_v4 = vrot.slane %v4379_v16, 7  ;;  %vm4441_vm13 = vmand %vm1271_vm0, %vm5359_vm2  ;;  %v1143_v53 = vsel %vm1135_vm4, 1, %v3376_v0  ;;  %vm628_vm0 = vcmp.eq.s32.totalorder %v4131_v54, 1  ;;  %vm5369_vm4 = vcmp.lt.s32.totalorder %v4070_v46, 8  ;;  %2250 = vmatpush.bf16.msrb.mxu1 %v3054_v22  ;;  %v3052_v22 = vld [vmem:[#allocation5 + $0x128] sm:$0xff] }
  0xe4   : > { %v4387_v21 = vpop.permute.xlu2 %1219  ;;  %1058 = vperm.xlu1 %3194, %v1039_v19   ;;  %vm1025_vm1 = vmand %vm5363_vm10, %vm5362_vm14  ;;  %v722_v19 = vsel %vm714_vm12, %v4377_v17, 0.0  ;;  %v1287_v54 = vsel %vm4441_vm13, 1, %v3376_v0  ;;  %v738_v5 = vrot.slane %v4379_v16, 1  ;;  %vm5372_vm12 = vcmp.ge.s32.totalorder %v3814_v26, 0 }
  0xe5   : > { %v462_v32 = vpop.f32.mrf.mxu3  ;;  %v4425_v35 = vsel %vm512_vm11, %v502_v45, %v503_v4  ;;  %vm1024_vm6 = vmand %vm5365_vm3, %vm5364_vm9  ;;  %vm5184_vm13 = vcmp.lt.s32.totalorder %v4375_v39, 7  ;;  %v4566_v46 = vmax.f32 %v461_v23, 0.0 }
  0xe6   : > { %v4411_v8 = vpop.permute.xlu1 %920  ;;  %v455_v57 = vpop.f32.mrf.mxu0  ;;  %v635_v59 = vsel %vm627_vm5, %v4425_v35, 0.0  ;;  %vm4464_vm5 = vmand %vm1025_vm1, %vm5366_vm8  ;;  %v463_v51 = vadd.f32 %v4313_v31, %v462_v32 }
  0xe7   : > { %1055 = vperm.xlu0 %3195, %v1038_v41   ;;  %v456_v63 = vadd.f32 %v4313_v31, %v455_v57  ;;  %v643_v27 = vpack.c.bf16 %v635_v59, %v635_v59  ;;  %vm4480_vm2 = vmand %vm1024_vm6, %vm5369_vm4  ;;  %v1041_v50 = vsel %vm4464_vm5, 1, %v3376_v0  ;;  %v730_v57 = vpack.c.bf16 %v722_v19, %v722_v19 }
  0xe8   : > { %vm4491_vm14 = vmand %vm4204_vm15, %vm5372_vm12  ;;  %vm923_vm6 = vcmp.eq.s32.totalorder %v4202_v33, 1  ;;  %v1040_v19 = vsel %vm4480_vm2, 1, %v3376_v0  ;;  %vm625_vm2 = vcmp.eq.s32.totalorder %v4209_v36, 1  ;;  %vm925_vm12 = vcmp.eq.s32.totalorder %v4235_v58, 1 }
  0xe9   : > { %v4427_v2 = vpop.permute.xlu0 %917  ;;  %v4437_v62 = vmax.f32 %v456_v63, 0.0  ;;  %vm5375_vm10 = vmmov %vm5364_vm9  ;;  %v3078_v63 = vld [vmem:[#allocation5 + $0x1f8] sm:$0xff]  ;;  %vm5378_vm9 = vcmp.ge.s32.totalorder %v3849_v43, 0  ;;  %v4523_v20 = vunpack.c.l.b16 %v643_v27  ;;  %v4591_v10 = vunpack.c.l.b16 %v730_v57 }
  0xea   : > { %1159 = vperm.xlu2 %3196, %v1142_v15   ;;  %vm4508_vm1 = vmand %vm4204_vm15, %vm5375_vm10  ;;  %vm924_vm15 = vcmp.eq.s32.totalorder %v4171_v38, 1  ;;  %2337 = vmatpush.bf16.msra.mxu0 %v3078_v63  ;;  %vm713_vm10 = vcmp.eq.s32.totalorder %v4308_v12, 1 }
  0xeb   : > { %v504_v24 = vrot.slane %v4437_v62, 7  ;;  %vm4519_vm3 = vmand %vm4218_vm7, %vm5378_vm9 }
  0xec   : > { %v4451_v9 = vpop.permute.xlu2 %705  ;;  %1303 = vperm.xlu1 %3194, %v1286_v25   ;;  %vm5384_vm5 = vmmov %vm5369_vm4 }
  0xed   : > { %v465_v55 = vpop.f32.mrf.mxu3  ;;  %v4473_v60 = vsel %vm512_vm11, %v503_v4, %v504_v24  ;;  %v737_v4 = vrot.slane %v4377_v17, 1  ;;  %vm4547_vm4 = vmand %vm4508_vm1, %vm5384_vm5  ;;  %vm5387_vm1 = vcmp.lt.s32.totalorder %v3849_v43, 8  ;;  %vm827_vm5 = vcmp.eq.s32.totalorder %v4364_v40, 1 }
  0xee   : > { %v4460_v13 = vpop.permute.xlu1 %809  ;;  %v457_v56 = vpop.f32.mrf.mxu0  ;;  %v636_v37 = vsel %vm628_vm0, %v4473_v60, 0.0  ;;  %v466_v32 = vadd.f32 %v4313_v31, %v465_v55  ;;  %vm5381_vm0 = vcmp.lt.s32.totalorder %v3814_v26, 8  ;;  %vm4572_vm9 = vmand %vm4519_vm3, %vm5387_vm1  ;;  %v1288_v15 = vsel %vm4547_vm4, 1, %v3376_v0 }
  0xef   : > { %1162 = vperm.xlu0 %3195, %v1143_v53   ;;  %v458_v41 = vadd.f32 %v4313_v31, %v457_v56  ;;  %v644_v49 = vpack.c.bf16 %v636_v37, %v636_v37  ;;  %vm4534_vm8 = vmand %vm4491_vm14, %vm5381_vm0  ;;  %v4557_v55 = vsel %vm5184_vm13, %v737_v4, %v738_v5  ;;  %vm715_vm14 = vcmp.eq.s32.totalorder %v4284_v29, 1 }
  0xf0   : > { %v4578_v56 = vmax.f32 %v463_v51, 0.0  ;;  %v1144_v1 = vsel %vm4534_vm8, 1, %v3376_v0  ;;  %vm5390_vm13 = vcmp.ge.s32.totalorder %v4089_v34, 0  ;;  %v4593_v40 = vmax.f32 %v466_v32, 0.0  ;;  %v3077_v32 = vld [vmem:[#allocation5 + $0x1f0] sm:$0xff] }
  0xf1   : > { %v4499_v61 = vpop.permute.xlu0 %699  ;;  %v4513_v25 = vmax.f32 %v458_v41, 0.0  ;;  %v4525_v59 = vunpack.c.l.b16 %v644_v49  ;;  %vm4587_vm3 = vmand %vm4218_vm7, %vm5390_vm13  ;;  %v3053_v49 = vld [vmem:[#allocation5 + $0x130] sm:$0xff]  ;;  %vm927_vm8 = vcmp.eq.s32.totalorder %v4193_v6, 1  ;;  %vm826_vm0 = vcmp.eq.s32.totalorder %v4226_v3, 1  ;;  %2338 = vmatpush.bf16.msra.mxu0 %v3077_v32 }
  0xf2   : > { %1306 = vperm.xlu2 %3196, %v1287_v54   ;;  %v1145_v57 = vsel %vm4572_vm9, 1, %v3376_v0  ;;  %2251 = vmatpush.bf16.msrb.mxu1 %v3053_v49  ;;  %vm922_vm7 = vcmp.eq.s32.totalorder %v4173_v7, 1  ;;  %vm5393_vm13 = vcmp.lt.s32.totalorder %v4089_v34, 8  ;;  %v931_v26 = vsel %vm923_vm6, %v4425_v35, 0.0 }
  0xf3   : > { %v505_v27 = vrot.slane %v4513_v25, 7  ;;  %vm4625_vm4 = vmand %vm4587_vm3, %vm5393_vm13  ;;  %v932_v54 = vsel %vm924_vm15, %v4473_v60, 0.0  ;;  %v507_v29 = vrot.slane %v4578_v56, 7  ;;  %v508_v58 = vrot.slane %v4593_v40, 7 }
  0xf4   : > { %v4538_v14 = vpop.permute.xlu2 %977  ;;  %1064 = vperm.xlu1 %3194, %v1041_v50   ;;  %v835_v50 = vsel %vm827_vm5, %v4557_v55, 0.0  ;;  %v1289_v38 = vsel %vm4625_vm4, 1, %v3376_v0  ;;  %vm630_vm15 = vcmp.eq.s32.totalorder %v4273_v11, 1  ;;  %v939_v0 = vpack.c.bf16 %v931_v26, %v931_v26 }
  0xf5   : > { %v467_v41 = vpop.f32.mrf.mxu3  ;;  %v843_v34 = vpack.c.bf16 %v835_v50, %v835_v50  ;;  %vm926_vm6 = vcmp.eq.s32.totalorder %v4262_v44, 1  ;;  %vm631_vm9 = vcmp.eq.s32.totalorder %v4342_v47, 1  ;;  %vm632_vm5 = vcmp.eq.s32.totalorder %v4253_v28, 1 }
  0xf6   : > { %v975_v37 = vpop.permute.xlu1 %974  ;;  %v468_v23 = vadd.f32 %v4313_v31, %v467_v41  ;;  %v4614_v31 = vsel %vm512_vm11, %v504_v24, %v505_v27  ;;  %v4632_v24 = vsel %vm715_vm14, %v4379_v16, 0.0  ;;  %vm5397_vm14 = vcmp.eq.s32.totalorder %v4240_v42, 1  ;;  %2252 = vmatpush.bf16.msrb.mxu1 %v3052_v22 }
  0xf7   : > { %1061 = vperm.xlu0 %3195, %v1040_v19   ;;  %vm995_vm1 = vcmp.eq.s32.totalorder %v975_v37, 1  ;;  %v933_v53 = vsel %vm925_vm12, %v4614_v31, 0.0  ;;  %v506_v19 = vrot.slane %v4566_v46, 7  ;;  %vm629_vm12 = vcmp.eq.s32.totalorder %v4160_v48, 1 }
  0xf8   : > { %v4600_v18 = vsel %vm995_vm1, %v4379_v16, 0.0  ;;  %v4619_v51 = vmax.f32 %v468_v23, 0.0  ;;  %vm829_vm3 = vcmp.eq.s32.totalorder %v4330_v52, 1  ;;  %v5186_v7 = vrot.slane %v4513_v25, 1 }
  0xf9   : > { %v4617_v63 = vpop.permute.xlu0 %971  ;;  %v4681_v12 = vsel %vm512_vm11, %v506_v19, %v507_v29  ;;  %vm828_vm13 = vcmp.eq.s32.totalorder %v4460_v13, 1  ;;  %v1011_v48 = vpack.c.bf16 %v4600_v18, %v4600_v18  ;;  %v4777_v44 = vsel %vm512_vm11, %v507_v29, %v508_v58  ;;  %v3050_v13 = vld [vmem:[#allocation5 + $0x118] sm:$0xff]  ;;  %v3061_v29 = vld [vmem:[#allocation5 + $0x170] sm:$0xff] }
  0xfa   : > { %1165 = vperm.xlu2 %3196, %v1144_v1   ;;  %v721_v37 = vsel %vm713_vm10, %v4619_v51, 0.0  ;;  %v509_v41 = vrot.slane %v4619_v51, 7  ;;  %v941_v1 = vpack.c.bf16 %v933_v53, %v933_v53  ;;  %v5185_v49 = vrot.slane %v4619_v51, 1 }
  0xfb   : > { %v729_v43 = vpack.c.bf16 %v721_v37, %v721_v37  ;;  %v1395_v37 = vunpack.c.l.b16 %v843_v34  ;;  %vm5398_vm10 = vcmp.lt.s32.totalorder %v4375_v39, 7  ;;  %vm994_vm1 = vcmp.eq.s32.totalorder %v4617_v63, 1 }
  0xfc   : > { %v4651_v33 = vpop.permute.xlu2 %1228  ;;  %1309 = vperm.xlu1 %3194, %v1288_v15   ;;  %v4664_v23 = vsel %vm512_vm11, %v508_v58, %v509_v41  ;;  %v4670_v50 = vsel %vm512_vm11, %v509_v41, %v502_v45  ;;  %v940_v15 = vpack.c.bf16 %v932_v54, %v932_v54  ;;  %v739_v45 = vrot.slane %v4437_v62, 1 }
  0xfd   : > { %5396 = vst [vmem:[#allocation12_spill] sm:$0xff] %v4670_v50  ;;  %v1370_v32 = vunpack.c.l.b16 %v729_v43  ;;  %v633_v53 = vsel %vm625_vm2, %v4664_v23, 0.0  ;;  %v634_v26 = vsel %vm5397_vm14, %v4670_v50, 0.0  ;;  %v4688_v36 = vunpack.c.l.b16 %v941_v1 }
  0xfe   : > { %v4672_v30 = vpop.permute.xlu1 %702  ;;  %v641_v54 = vpack.c.bf16 %v633_v53, %v633_v53  ;;  %vm716_vm2 = vcmp.eq.s32.totalorder %v4499_v61, 1  ;;  %v642_v41 = vpack.c.bf16 %v634_v26, %v634_v26  ;;  %v4698_v43 = vsel %vm5398_vm10, %v5185_v49, %v737_v4 }
  0xff   : > { %1168 = vperm.xlu0 %3195, %v1145_v57   ;;  %v1378_v34 = vpack.c.b16 %v4591_v10, %v1370_v32  ;;  %v834_v1 = vsel %vm826_vm0, %v4698_v43, 0.0  ;;  %v4706_v10 = vunpack.c.l.b16 %v940_v15  ;;  %v3076_v32 = vld [vmem:[#allocation5 + $0x1e8] sm:$0xff]  ;;  %v935_v53 = vsel %vm927_vm8, %v4681_v12, 0.0 }
 0x100   : > { %v1346_v57 = vunpack.c.l.b16 %v641_v54  ;;  %v1347_v4 = vunpack.c.l.b16 %v642_v41  ;;  %v842_v22 = vpack.c.bf16 %v834_v1, %v834_v1  ;;  %v930_v3 = vsel %vm922_vm7, %v4670_v50, 0.0  ;;  %2339 = vmatpush.bf16.msra.mxu0 %v3076_v32  ;;  %vm5399_vm7 = vmmov %vm5398_vm10 }
 0x101   : > { %v4701_v42 = vpop.permute.xlu0 %1222  ;;  %2171 = vmatmul.bf16.vlgmr.msra.gmra.mxu2 %v1378_v34  ;;  %v724_v15 = vsel %vm716_vm2, %v4437_v62, 0.0  ;;  %v938_v6 = vpack.c.bf16 %v930_v3, %v930_v3  ;;  %vm929_vm0 = vcmp.eq.s32.totalorder %v4411_v8, 1  ;;  %vm928_vm8 = vcmp.eq.s32.totalorder %v4427_v2, 1  ;;  %vm5400_vm4 = vmmov %vm5399_vm7 }
 0x102   : > { %1312 = vperm.xlu2 %3196, %v1289_v38   ;;  %v4726_v38 = vsel %vm512_vm11, %v505_v27, %v506_v19  ;;  %v1354_v54 = vpack.c.b16 %v1347_v4, %v1346_v57  ;;  %v1394_v61 = vunpack.c.l.b16 %v842_v22  ;;  %v1419_v34 = vunpack.c.l.b16 %v939_v0  ;;  %v3051_v4 = vld [vmem:[#allocation5 + $0x120] sm:$0xff] }
 0x103   : > { %v1002_v41 = vsel %vm994_vm1, %v4377_v17, 0.0  ;;  %v1418_v32 = vunpack.c.l.b16 %v938_v6  ;;  %v637_v27 = vsel %vm629_vm12, %v4614_v31, 0.0  ;;  %v943_v19 = vpack.c.bf16 %v935_v53, %v935_v53  ;;  %2253 = vmatpush.bf16.msrb.mxu1 %v3051_v4 }
 0x104   : > { %v4734_v1 = vpop.permute.xlu2 %821  ;;  %v4743_v3 = vsel %vm5399_vm7, %v738_v5, %v739_v45  ;;  %v732_v57 = vpack.c.bf16 %v724_v15, %v724_v15  ;;  %2142 = vmatmul.bf16.vlgmr.msra.gmra.mxu1 %v1354_v54  ;;  %v1402_v63 = vpack.c.b16 %v1395_v37, %v1394_v61  ;;  %v638_v22 = vsel %vm630_vm15, %v4726_v38, 0.0  ;;  %v3062_v37 = vld [vmem:[#allocation5 + $0x178] sm:$0xff]  ;;  %v3075_v54 = vld [vmem:[#allocation5 + $0x1e0] sm:$0xff] }
 0x105   : > { %v1426_v53 = vpack.c.b16 %v1419_v34, %v1418_v32  ;;  %v645_v6 = vpack.c.bf16 %v637_v27, %v637_v27  ;;  %v1010_v49 = vpack.c.bf16 %v1002_v41, %v1002_v41  ;;  %v4757_v5 = vsel %vm5400_vm4, %v739_v45, %v5186_v7  ;;  %2279 = vmatpush.bf16.msrb.mxu2 %v3062_v37 }
 0x106   : > { %v4745_v0 = vpop.permute.xlu1 %818  ;;  %2200 = vmatmul.bf16.vlgmr.msrb.gmra.mxu3 %v1402_v63  ;;  %v646_v15 = vpack.c.bf16 %v638_v22, %v638_v22  ;;  %v934_v11 = vsel %vm926_vm6, %v4726_v38, 0.0  ;;  %vm996_vm12 = vcmp.eq.s32.totalorder %v4538_v14, 1  ;;  %v4767_v41 = vunpack.c.l.b16 %v943_v19  ;;  %2340 = vmatpush.bf16.msra.mxu0 %v3075_v54 }
 0x107   : > { %2229 = vmatmul.bf16.vlgmr.msrb.gmra.mxu0 %v1426_v53  ;;  %v4765_v61 = vunpack.c.l.b16 %v645_v6  ;;  %v942_v34 = vpack.c.bf16 %v934_v11, %v934_v11  ;;  %v1373_v45 = vunpack.c.l.b16 %v732_v57  ;;  %v639_v27 = vsel %vm631_vm9, %v4681_v12, 0.0  ;;  %2254 = vmatpush.bf16.msrb.mxu1 %v3050_v13  ;;  %vm5404_vm9 = vmmov %vm5400_vm4 }
 0x108   : > { %v4769_v32 = vunpack.c.l.b16 %v646_v15  ;;  %v4782_v63 = vunpack.c.l.b16 %v1011_v48  ;;  %v837_v19 = vsel %vm829_vm3, %v4757_v5, 0.0  ;;  %v640_v4 = vsel %vm632_vm5, %v4777_v44, 0.0  ;;  %vm5406_vm5 = vmmov %vm5400_vm4 }
 0x109   : > { %v4763_v18 = vpop.permute.xlu0 %815  ;;  %v4787_v57 = vunpack.c.l.b16 %v942_v34  ;;  %v4792_v22 = vunpack.c.l.b16 %v1010_v49  ;;  %v647_v47 = vpack.c.bf16 %v639_v27, %v639_v27  ;;  %v648_v58 = vpack.c.bf16 %v640_v4, %v640_v4  ;;  %2280 = vmatpush.bf16.msrb.mxu2 %v3061_v29 }
 0x10a   : > { %v836_v48 = vsel %vm828_vm13, %v4743_v3, 0.0  ;;  %v936_v53 = vsel %vm928_vm8, %v4777_v44, 0.0  ;;  %v937_v28 = vsel %vm929_vm0, %v4664_v23, 0.0  ;;  %v5401_v6 = vpack.c.bf16 %v4632_v24, %v4632_v24  ;;  %v3072_v24 = vld [vmem:[#allocation5 + $0x1c8] sm:$0xff]  ;;  %vm5410_vm13 = vmmov %vm5400_vm4 }
 0x10b   : > { %v845_v15 = vpack.c.bf16 %v837_v19, %v837_v19  ;;  %v4812_v11 = vunpack.c.l.b16 %v647_v47  ;;  %v4814_v54 = vunpack.c.l.b16 %v648_v58  ;;  %v1004_v2 = vsel %vm996_vm12, %v4437_v62, 0.0  ;;  %v3074_v58 = vld [vmem:[#allocation5 + $0x1d8] sm:$0xff] }
 0x10c   : > { %v1372_v37 = vunpack.c.l.b16 %v5401_v6  ;;  %v4819_v34 = vpop.permute.xlu2 %986  ;;  %v944_v8 = vpack.c.bf16 %v936_v53, %v936_v53  ;;  %v945_v27 = vpack.c.bf16 %v937_v28, %v937_v28  ;;  %v844_v4 = vpack.c.bf16 %v836_v48, %v836_v48  ;;  %v3070_v6 = vld [vmem:[#allocation5 + $0x1b8] sm:$0xff]  ;;  %2341 = vmatpush.bf16.msra.mxu0 %v3074_v58  ;;  %v3069_v53 = vld [vmem:[#allocation5 + $0x1b0] sm:$0xff] }
 0x10d   : > { %v1012_v26 = vpack.c.bf16 %v1004_v2, %v1004_v2  ;;  %vm717_vm11 = vcmp.eq.s32.totalorder %v4672_v30, 1  ;;  %2308 = vmatpush.bf16.msra.mxu3 %v3070_v6  ;;  %vm718_vm6 = vcmp.eq.s32.totalorder %v4451_v9, 1  ;;  %v3049_v9 = vld [vmem:[#allocation5 + $0x110] sm:$0xff]  ;;  %v741_v29 = vrot.slane %v4566_v46, 1 }
 0x10e   : > { %v4807_v49 = vpop.permute.xlu1 %1225  ;;  %v1379_v52 = vpack.c.b16 %v1373_v45, %v1372_v37  ;;  %v4825_v7 = vunpack.c.l.b16 %v944_v8  ;;  %v4827_v14 = vunpack.c.l.b16 %v945_v27  ;;  %v1397_v45 = vunpack.c.l.b16 %v845_v15  ;;  %v3060_v8 = vld [vmem:[#allocation5 + $0x168] sm:$0xff]  ;;  %2255 = vmatpush.bf16.msrb.mxu1 %v3049_v9 }
 0x10f   : > { %v1396_v37 = vunpack.c.l.b16 %v844_v4  ;;  %v725_v2 = vsel %vm717_vm11, %v4513_v25, 0.0  ;;  %v4835_v30 = vunpack.c.l.b16 %v1012_v26  ;;  %v726_v4 = vsel %vm718_vm6, %v4566_v46, 0.0  ;;  %2281 = vmatpush.bf16.msrb.mxu2 %v3060_v8 }
 0x110   : > { %v733_v6 = vpack.c.bf16 %v725_v2, %v725_v2  ;;  %vm831_vm14 = vcmp.eq.s32.totalorder %v4745_v0, 1  ;;  %vm830_vm2 = vcmp.eq.s32.totalorder %v4763_v18, 1  ;;  %vm999_vm10 = vcmp.eq.s32.totalorder %v4819_v34, 1  ;;  %v3048_v0 = vld [vmem:[#allocation5 + $0x108] sm:$0xff]  ;;  %v3066_v34 = vld [vmem:[#allocation5 + $0x198] sm:$0xff] }
 0x111   : > { %v981_v47 = vpop.permute.xlu0 %980  ;;  %2176 = vmatmul.bf16.gmra.mxu2 %v1379_v52  ;;  %v5187_v52 = vrot.slane %v4578_v56, 1  ;;  %v1403_v58 = vpack.c.b16 %v1397_v45, %v1396_v37  ;;  %2309 = vmatpush.bf16.msra.mxu3 %v3069_v53  ;;  %v5403_v45 = vpack.c.b16 %v4688_v36, %v4706_v10  ;;  %v3068_v53 = vld [vmem:[#allocation5 + $0x1a8] sm:$0xff]  ;;  %v3059_v37 = vld [vmem:[#allocation5 + $0x160] sm:$0xff]  ;;  %v5405_v2 = vrot.slane %v4513_v25, 1 }
 0x112   : > { %vm997_vm15 = vcmp.eq.s32.totalorder %v981_v47, 1  ;;  %v5402_v47 = vpack.c.b16 %v4525_v59, %v4523_v20  ;;  %v1374_v9 = vunpack.c.l.b16 %v733_v6  ;;  %2256 = vmatpush.bf16.msrb.mxu1 %v3048_v0  ;;  %v5408_v0 = vpack.c.b16 %v4767_v41, %v4787_v57 }
 0x113   : > { %v1005_v48 = vsel %vm997_vm15, %v4513_v25, 0.0  ;;  %v4861_v8 = vsel %vm5404_vm9, %v741_v29, %v5187_v52  ;;  %2282 = vmatpush.bf16.msrb.mxu2 %v3059_v37  ;;  %v3057_v52 = vld [vmem:[#allocation5 + $0x150] sm:$0xff]  ;;  %vm832_vm7 = vcmp.eq.s32.totalorder %v4734_v1, 1  ;;  %v5411_v41 = vrot.slane %v4578_v56, 1 }
 0x114   : > { %v1013_v13 = vpack.c.bf16 %v1005_v48, %v1005_v48  ;;  %2147 = vmatmul.bf16.gmra.mxu1 %v5402_v47  ;;  %v4852_v20 = vpop.permute.xlu2 %1043  ;;  %v3073_v48 = vld [vmem:[#allocation5 + $0x1d0] sm:$0xff]  ;;  %v4867_v47 = vsel %vm5406_vm5, %v5405_v2, %v741_v29  ;;  %v839_v36 = vsel %vm831_vm14, %v4861_v8, 0.0  ;;  %vm1243_vm6 = vcmp.eq.s32.totalorder %v4701_v42, 1 }
 0x115   : > { %v838_v10 = vsel %vm830_vm2, %v4867_v47, 0.0  ;;  %2342 = vmatpush.bf16.msra.mxu0 %v3073_v48  ;;  %2310 = vmatpush.bf16.msra.mxu3 %v3068_v53  ;;  %v847_v2 = vpack.c.bf16 %v839_v36, %v839_v36  ;;  %vm1066_vm11 = vcmp.eq.s32.totalorder %v4852_v20, 1  ;;  %v5413_v20 = vpack.c.b16 %v4827_v14, %v4825_v7 }
 0x116   : > { %v4838_v15 = vunpack.c.l.b16 %v1013_v13  ;;  %v4840_v27 = vpop.permute.xlu1 %711  ;;  %2205 = vmatmul.bf16.gmra.mxu3 %v1403_v58  ;;  %v734_v13 = vpack.c.bf16 %v726_v4, %v726_v4  ;;  %v3067_v58 = vld [vmem:[#allocation5 + $0x1a0] sm:$0xff]  ;;  %v1007_v4 = vsel %vm999_vm10, %v4578_v56, 0.0  ;;  %v846_v26 = vpack.c.bf16 %v838_v10, %v838_v10  ;;  %v3065_v10 = vld [vmem:[#allocation5 + $0x190] sm:$0xff] }
 0x117   : > { %2234 = vmatmul.bf16.gmra.mxu0 %v5403_v45  ;;  %v3058_v45 = vld [vmem:[#allocation5 + $0x158] sm:$0xff]  ;;  %v1015_v28 = vpack.c.bf16 %v1007_v4, %v1007_v4  ;;  %v1399_v37 = vunpack.c.l.b16 %v847_v2  ;;  %vm720_vm1 = vcmp.eq.s32.totalorder %v4840_v27, 1  ;;  %vm1242_vm2 = vcmp.eq.s32.totalorder %v4387_v21, 1 }
 0x118   : > { %v1375_v29 = vunpack.c.l.b16 %v734_v13  ;;  %2283 = vmatpush.bf16.msrb.mxu2 %v3058_v45  ;;  %v1398_v50 = vunpack.c.l.b16 %v846_v26  ;;  %v3047_v45 = vld [vmem:[#allocation5 + $0x100] sm:$0xff] }
 0x119   : > { %v709_v59 = vpop.permute.xlu0 %708  ;;  %2311 = vmatpush.bf16.msra.mxu3 %v3067_v58  ;;  %v4880_v13 = vunpack.c.l.b16 %v1015_v28  ;;  %2343 = vmatpush.bf16.msra.mxu0 %v3072_v24  ;;  %v3056_v58 = vld [vmem:[#allocation5 + $0x148] sm:$0xff]  ;;  %v5407_v28 = vpack.c.b16 %v4769_v32, %v4765_v61  ;;  %v743_v24 = vrot.slane %v4593_v40, 1  ;;  %v3055_v32 = vld [vmem:[#allocation5 + $0x140] sm:$0xff] }
 0x11a   : > { %v1380_v48 = vpack.c.b16 %v1375_v29, %v1374_v9  ;;  %vm719_vm0 = vcmp.eq.s32.totalorder %v709_v59, 1  ;;  %v728_v9 = vsel %vm720_vm1, %v4593_v40, 0.0  ;;  %v1404_v59 = vpack.c.b16 %v1399_v37, %v1398_v50  ;;  %2257 = vmatpush.bf16.msrb.mxu1 %v3047_v45  ;;  %v3064_v61 = vld [vmem:[#allocation5 + $0x188] sm:$0xff]  ;;  %v3086_v45 = vld [vmem:[#allocation5 + $0x238] sm:$0xff] }
 0x11b   : > { %v727_v4 = vsel %vm719_vm0, %v4578_v56, 0.0  ;;  %v5409_v50 = vrot.slane %v4619_v51, 1  ;;  %v4913_v57 = vsel %vm5400_vm4, %v5411_v41, %v743_v24  ;;  %vm1245_vm0 = vcmp.eq.s32.totalorder %v4651_v33, 1 }
 0x11c   : > { %2284 = vmatpush.bf16.msrb.mxu2 %v3057_v52  ;;  %v736_v52 = vpack.c.bf16 %v728_v9, %v728_v9  ;;  %v735_v29 = vpack.c.bf16 %v727_v4, %v727_v4  ;;  %v840_v1 = vsel %vm832_vm7, %v4913_v57, 0.0 }
 0x11d   : > { %2312 = vmatpush.bf16.msra.mxu3 %v3066_v34  ;;  %v848_v4 = vpack.c.bf16 %v840_v1, %v840_v1 }
 0x11e   : > { %v984_v19 = vpop.permute.xlu1 %983  ;;  %v1377_v34 = vunpack.c.l.b16 %v736_v52  ;;  %v1376_v37 = vunpack.c.l.b16 %v735_v29  ;;  %3104 = vmatpush.bf16.msra.mxu1 %v3086_v45  ;;  %v5412_v29 = vpack.c.b16 %v4814_v54, %v4812_v11  ;;  %v1251_v54 = vsel %vm1243_vm6, %v4437_v62, 0.0 }
 0x11f   : > { %vm998_vm3 = vcmp.eq.s32.totalorder %v984_v19, 1  ;;  %v4882_v19 = vpop.permute.xlu2 %1150  ;;  %v1400_v39 = vunpack.c.l.b16 %v848_v4 }
 0x120   : > { %v1006_v18 = vsel %vm998_vm3, %v4566_v46, 0.0  ;;  %2285 = vmatpush.bf16.msrb.mxu2 %v3056_v58  ;;  %vm1171_vm14 = vcmp.eq.s32.totalorder %v4882_v19, 1  ;;  %vm1244_vm3 = vcmp.eq.s32.totalorder %v4807_v49, 1 }
 0x121   : > { %v1014_v6 = vpack.c.bf16 %v1006_v18, %v1006_v18  ;;  %v825_v53 = vpop.permute.xlu0 %824  ;;  %2181 = vmatmul.bf16.gmra.mxu2 %v1380_v48  ;;  %2313 = vmatpush.bf16.msra.mxu3 %v3065_v10  ;;  %v3071_v18 = vld [vmem:[#allocation5 + $0x1c0] sm:$0xff]  ;;  %v4906_v48 = vsel %vm5410_vm13, %v743_v24, %v5409_v50  ;;  %v1179_v42 = vsel %vm1171_vm14, %v4473_v60, 0.0 }
 0x122   : > { %vm833_vm8 = vcmp.eq.s32.totalorder %v825_v53, 1  ;;  %2344 = vmatpush.bf16.msra.mxu0 %v3071_v18  ;;  %v3063_v53 = vld [vmem:[#allocation5 + $0x180] sm:$0xff] }
 0x123   : > { %v4884_v36 = vunpack.c.l.b16 %v1014_v6  ;;  %v841_v6 = vsel %vm833_vm8, %v4906_v48, 0.0 }
 0x124   : > { %2152 = vmatmul.bf16.gmra.mxu1 %v5407_v28  ;;  %2286 = vmatpush.bf16.msrb.mxu2 %v3055_v32  ;;  %v849_v58 = vpack.c.bf16 %v841_v6, %v841_v6  ;;  %v1381_v28 = vpack.c.b16 %v1377_v34, %v1376_v37  ;;  %v1250_v37 = vsel %vm1242_vm2, %v4379_v16, 0.0 }
 0x125   : > { %v1452_v27 = vpack.c.b16 %v4880_v13, %v4884_v36  ;;  %2314 = vmatpush.bf16.msra.mxu3 %v3064_v61  ;;  %v1074_v61 = vsel %vm1066_vm11, %v4557_v55, 0.0  ;;  %v1258_v19 = vpack.c.bf16 %v1250_v37, %v1250_v37 }
 0x126   : > { %v4890_v26 = vpop.permute.xlu1 %1234  ;;  %2210 = vmatmul.bf16.gmra.mxu3 %v1404_v59  ;;  %2366 = vmatpush.bf16.msrb.mxu0 %v3086_v45  ;;  %v1082_v41 = vpack.c.bf16 %v1074_v61, %v1074_v61 }
 0x127   : > { %2239 = vmatmul.bf16.gmra.mxu0 %v5408_v0  ;;  %v4916_v10 = vpop.permute.xlu2 %1237  ;;  %v1401_v0 = vunpack.c.l.b16 %v849_v58  ;;  %v1259_v58 = vpack.c.bf16 %v1251_v54, %v1251_v54  ;;  %v1514_v16 = vunpack.c.l.b16 %v1258_v19  ;;  %v1253_v54 = vsel %vm1245_vm0, %v4566_v46, 0.0 }
 0x128   : > { %v1466_v1 = vunpack.c.l.b16 %v1082_v41  ;;  %v1252_v41 = vsel %vm1244_vm3, %v4513_v25, 0.0  ;;  %v1261_v33 = vpack.c.bf16 %v1253_v54, %v1253_v54  ;;  %v5415_v19 = vpack.c.b16 %v4838_v15, %v4835_v30 }
 0x129   : > { %v4896_v2 = vpop.permute.xlu0 %1231  ;;  %2315 = vmatpush.bf16.msra.mxu3 %v3063_v53  ;;  %v1405_v18 = vpack.c.b16 %v1401_v0, %v1400_v39  ;;  %v3085_v53 = vld [vmem:[#allocation5 + $0x230] sm:$0xff]  ;;  %v1515_v62 = vunpack.c.l.b16 %v1259_v58  ;;  %vm1247_vm7 = vcmp.eq.s32.totalorder %v4890_v26, 1 }
 0x12a   : > { %2367 = vmatpush.bf16.msrb.mxu0 %v3085_v53  ;;  %3105 = vmatpush.bf16.msra.mxu1 %v3085_v53  ;;  %vm1246_vm13 = vcmp.eq.s32.totalorder %v4896_v2, 1  ;;  %v1255_v30 = vsel %vm1247_vm7, %v4593_v40, 0.0 }
 0x12e   : > { %v1148_v9 = vpop.permute.xlu1 %1147 }
 0x12f   : > { %v1053_v32 = vpop.permute.xlu2 %1052  ;;  %vm1170_vm15 = vcmp.eq.s32.totalorder %v1148_v9, 1  ;;  %v1187_v9 = vpack.c.bf16 %v1179_v42, %v1179_v42 }
 0x130   : > { %v1178_v11 = vsel %vm1170_vm15, %v4425_v35, 0.0  ;;  %v3084_v35 = vld [vmem:[#allocation5 + $0x228] sm:$0xff]  ;;  %vm1069_vm9 = vcmp.eq.s32.totalorder %v1053_v32, 1 }
 0x131   : > { %v1047_v59 = vpop.permute.xlu0 %1046  ;;  %2186 = vmatmul.bf16.gmra.mxu2 %v1381_v28  ;;  %v1186_v7 = vpack.c.bf16 %v1178_v11, %v1178_v11  ;;  %2368 = vmatpush.bf16.msrb.mxu0 %v3084_v35  ;;  %v1491_v60 = vunpack.c.l.b16 %v1187_v9  ;;  %v1077_v61 = vsel %vm1069_vm9, %v4867_v47, 0.0  ;;  %v1517_v9 = vunpack.c.l.b16 %v1261_v33 }
 0x132   : > { %vm1067_vm12 = vcmp.eq.s32.totalorder %v1047_v59, 1  ;;  %3106 = vmatpush.bf16.msra.mxu1 %v3084_v35  ;;  %vm1248_vm9 = vcmp.eq.s32.totalorder %v4916_v10, 1 }
 0x133   : > { %v1075_v24 = vsel %vm1067_vm12, %v4743_v3, 0.0  ;;  %v1490_v59 = vunpack.c.l.b16 %v1186_v7  ;;  %v1260_v7 = vpack.c.bf16 %v1252_v41, %v1252_v41 }
 0x134   : > { %2157 = vmatmul.bf16.gmra.mxu1 %v5412_v29  ;;  %v1083_v50 = vpack.c.bf16 %v1075_v24, %v1075_v24  ;;  %v5414_v24 = vpack.c.b16 %v4782_v63, %v4792_v22  ;;  %v3083_v29 = vld [vmem:[#allocation5 + $0x220] sm:$0xff] }
 0x135   : > { %v1498_v0 = vpack.c.b16 %v1491_v60, %v1490_v59  ;;  %2369 = vmatpush.bf16.msrb.mxu0 %v3083_v29  ;;  %v1516_v25 = vunpack.c.l.b16 %v1260_v7  ;;  %v3081_v59 = vld [vmem:[#allocation5 + $0x210] sm:$0xff] }
 0x136   : > { %v4920_v52 = vpop.permute.xlu1 %992  ;;  %2215 = vmatmul.bf16.gmra.mxu3 %v1405_v18  ;;  %v1467_v34 = vunpack.c.l.b16 %v1083_v50  ;;  %v1522_v18 = vpack.c.b16 %v1515_v62, %v1514_v16  ;;  %3107 = vmatpush.bf16.msra.mxu1 %v3083_v29  ;;  %v3079_v29 = vld [vmem:[#allocation5 + $0x200] sm:$0xff] }
 0x137   : > { %2244 = vmatmul.bf16.gmra.mxu0 %v5413_v20  ;;  %v4938_v28 = vpop.permute.xlu2 %1291  ;;  %v1085_v20 = vpack.c.bf16 %v1077_v61, %v1077_v61  ;;  %v1523_v62 = vpack.c.b16 %v1517_v9, %v1516_v25  ;;  %v1263_v61 = vpack.c.bf16 %v1255_v30, %v1255_v30  ;;  %vm1001_vm15 = vcmp.eq.s32.totalorder %v4920_v52, 1 }
 0x138   : > { %v1474_v4 = vpack.c.b16 %v1467_v34, %v1466_v1  ;;  %v3082_v1 = vld [vmem:[#allocation5 + $0x218] sm:$0xff]  ;;  %v1009_v7 = vsel %vm1001_vm15, %v4619_v51, 0.0  ;;  %v1256_v9 = vsel %vm1248_vm9, %v4619_v51, 0.0  ;;  %vm1314_vm7 = vcmp.eq.s32.totalorder %v4938_v28, 1 }
 0x139   : > { %v4927_v6 = vpop.permute.xlu0 %989  ;;  %v1469_v34 = vunpack.c.l.b16 %v1085_v20  ;;  %2370 = vmatpush.bf16.msrb.mxu0 %v3082_v1  ;;  %v1519_v41 = vunpack.c.l.b16 %v1263_v61  ;;  %v1017_v13 = vpack.c.bf16 %v1009_v7, %v1009_v7  ;;  %v1322_v61 = vsel %vm1314_vm7, %v4743_v3, 0.0 }
 0x13a   : > { %3108 = vmatpush.bf16.msra.mxu1 %v3082_v1  ;;  %vm1000_vm6 = vcmp.eq.s32.totalorder %v4927_v6, 1 }
 0x13d   : > { %2371 = vmatpush.bf16.msrb.mxu0 %v3081_v59 }
 0x13e   : > { %v1050_v14 = vpop.permute.xlu1 %1049  ;;  %3109 = vmatpush.bf16.msra.mxu1 %v3081_v59 }
 0x13f   : > { %vm1068_vm10 = vcmp.eq.s32.totalorder %v1050_v14, 1  ;;  %v4949_v53 = vpop.permute.xlu2 %1300 }
 0x140   : > { %v1076_v45 = vsel %vm1068_vm10, %v4757_v5, 0.0  ;;  %vm1317_vm0 = vcmp.eq.s32.totalorder %v4949_v53, 1  ;;  %v1330_v53 = vpack.c.bf16 %v1322_v61, %v1322_v61 }
 0x141   : > { %v4940_v21 = vpop.permute.xlu0 %1240  ;;  %2287 = vmatmul.bf16.vlgmr.msrb.gmra.mxu2 %v1474_v4  ;;  %v1084_v50 = vpack.c.bf16 %v1076_v45, %v1076_v45 }
 0x142   : > { %vm1249_vm2 = vcmp.eq.s32.totalorder %v4940_v21, 1 }
 0x143   : > { %v1468_v11 = vunpack.c.l.b16 %v1084_v50 }
 0x144   : > { %2258 = vmatmul.bf16.vlgmr.msrb.gmra.mxu1 %v5414_v24 }
 0x145   : > { %v1475_v14 = vpack.c.b16 %v1469_v34, %v1468_v11 }
 0x146   : > { %v1157_v39 = vpop.permute.xlu1 %1156  ;;  %2316 = vmatmul.bf16.vlgmr.msra.gmra.mxu3 %v1498_v0  ;;  %v3080_v0 = vld [vmem:[#allocation5 + $0x208] sm:$0xff] }
 0x147   : > { %vm1173_vm5 = vcmp.eq.s32.totalorder %v1157_v39, 1  ;;  %2345 = vmatmul.bf16.vlgmr.msra.gmra.mxu0 %v1522_v18  ;;  %v1160_v4 = vpop.permute.xlu2 %1159  ;;  %v1254_v39 = vsel %vm1246_vm13, %v4578_v56, 0.0  ;;  %3110 = vmatpush.bf16.msra.mxu1 %v3080_v0 }
 0x148   : > { %v1181_v63 = vsel %vm1173_vm5, %v4726_v38, 0.0  ;;  %vm1174_vm12 = vcmp.eq.s32.totalorder %v1160_v4, 1  ;;  %2372 = vmatpush.bf16.msrb.mxu0 %v3080_v0  ;;  %v1262_v50 = vpack.c.bf16 %v1254_v39, %v1254_v39 }
 0x149   : > { %v1154_v32 = vpop.permute.xlu0 %1153  ;;  %v1189_v49 = vpack.c.bf16 %v1181_v63, %v1181_v63 }
 0x14a   : > { %vm1172_vm1 = vcmp.eq.s32.totalorder %v1154_v32, 1  ;;  %v1182_v32 = vsel %vm1174_vm12, %v4681_v12, 0.0  ;;  %v1518_v11 = vunpack.c.l.b16 %v1262_v50 }
 0x14b   : > { %v1180_v22 = vsel %vm1172_vm1, %v4614_v31, 0.0  ;;  %v1493_v38 = vunpack.c.l.b16 %v1189_v49  ;;  %3111 = vmatpush.bf16.msra.mxu1 %v3079_v29  ;;  %v1190_v56 = vpack.c.bf16 %v1182_v32, %v1182_v32 }
 0x14c   : > { %v1188_v42 = vpack.c.bf16 %v1180_v22, %v1180_v22  ;;  %2373 = vmatpush.bf16.msrb.mxu0 %v3079_v29  ;;  %v1524_v1 = vpack.c.b16 %v1519_v41, %v1518_v11  ;;  %v1325_v29 = vsel %vm1317_vm0, %v4861_v8, 0.0  ;;  %v1538_v41 = vunpack.c.l.b16 %v1330_v53 }
 0x14d   : > { %v1494_v49 = vunpack.c.l.b16 %v1190_v56  ;;  %v1333_v50 = vpack.c.bf16 %v1325_v29, %v1325_v29 }
 0x14e   : > { %v4955_v37 = vpop.permute.xlu1 %1297  ;;  %v1492_v31 = vunpack.c.l.b16 %v1188_v42 }
 0x14f   : > { %v4971_v20 = vpop.permute.xlu2 %1306  ;;  %vm1316_vm1 = vcmp.eq.s32.totalorder %v4955_v37, 1 }
 0x150   : > { %v1499_v35 = vpack.c.b16 %v1493_v38, %v1492_v31  ;;  %v1257_v31 = vsel %vm1249_vm2, %v4377_v17, 0.0 }
 0x151   : > { %v4957_v58 = vpop.permute.xlu0 %1294  ;;  %2292 = vmatmul.bf16.gmra.mxu2 %v1475_v14  ;;  %v1008_v14 = vsel %vm1000_vm6, %v4593_v40, 0.0  ;;  %v1265_v4 = vpack.c.bf16 %v1257_v31, %v1257_v31 }
 0x152   : > { %v1016_v36 = vpack.c.bf16 %v1008_v14, %v1008_v14 }
 0x154   : > { %2263 = vmatmul.bf16.gmra.mxu1 %v5415_v19  ;;  %v1449_v19 = vunpack.c.l.b16 %v1017_v13 }
 0x156   : > { %v1059_v46 = vpop.permute.xlu1 %1058  ;;  %2321 = vmatmul.bf16.gmra.mxu3 %v1499_v35  ;;  %v1448_v35 = vunpack.c.l.b16 %v1016_v36 }
 0x157   : > { %vm1071_vm8 = vcmp.eq.s32.totalorder %v1059_v46, 1  ;;  %2350 = vmatmul.bf16.gmra.mxu0 %v1523_v62  ;;  %v1166_v52 = vpop.permute.xlu2 %1165  ;;  %v1264_v62 = vpack.c.bf16 %v1256_v9, %v1256_v9 }
 0x158   : > { %v1079_v60 = vsel %vm1071_vm8, %v4913_v57, 0.0  ;;  %vm1176_vm5 = vcmp.eq.s32.totalorder %v1166_v52, 1  ;;  %v1453_v30 = vpack.c.b16 %v1449_v19, %v1448_v35  ;;  %vm1315_vm8 = vcmp.eq.s32.totalorder %v4957_v58, 1 }
 0x159   : > { %v1087_v16 = vpack.c.bf16 %v1079_v60, %v1079_v60  ;;  %v1056_v45 = vpop.permute.xlu0 %1055  ;;  %v1184_v46 = vsel %vm1176_vm5, %v4664_v23, 0.0  ;;  %v1323_v37 = vsel %vm1315_vm8, %v4757_v5, 0.0  ;;  %v1541_v58 = vunpack.c.l.b16 %v1333_v50 }
 0x15a   : > { %vm1070_vm4 = vcmp.eq.s32.totalorder %v1056_v45, 1  ;;  %v1192_v60 = vpack.c.bf16 %v1184_v46, %v1184_v46  ;;  %v5416_v45 = vld [vmem:[#allocation12_spill] sm:$0xff]  ;;  %v1331_v32 = vpack.c.bf16 %v1323_v37, %v1323_v37 }
 0x15b   : > { %v1078_v15 = vsel %vm1070_vm4, %v4861_v8, 0.0  ;;  %v1471_v26 = vunpack.c.l.b16 %v1087_v16  ;;  %v1521_v16 = vunpack.c.l.b16 %v1265_v4  ;;  %vm1319_vm4 = vcmp.eq.s32.totalorder %v4971_v20, 1 }
 0x15c   : > { %v1086_v24 = vpack.c.bf16 %v1078_v15, %v1078_v15  ;;  %v1520_v15 = vunpack.c.l.b16 %v1264_v62  ;;  %v1496_v51 = vunpack.c.l.b16 %v1192_v60 }
 0x15e   : > { %v1470_v18 = vunpack.c.l.b16 %v1086_v24  ;;  %v4968_v2 = vpop.permute.xlu1 %1303  ;;  %v1525_v23 = vpack.c.b16 %v1521_v16, %v1520_v15  ;;  %v1324_v24 = vsel %vm1316_vm1, %v4867_v47, 0.0  ;;  %v5000_v47 = vld [vmem:[%s5102_s5] ss:$0 sm:$0xff] }
 0x15f   : > { %vm1318_vm13 = vcmp.eq.s32.totalorder %v4968_v2, 1 }
 0x160   : > { %v1476_v63 = vpack.c.b16 %v1471_v26, %v1470_v18  ;;  %v1332_v18 = vpack.c.bf16 %v1324_v24, %v1324_v24 }
 0x161   : > { %v1163_v22 = vpop.permute.xlu0 %1162 }
 0x162   : > { %vm1175_vm11 = vcmp.eq.s32.totalorder %v1163_v22, 1  ;;  %2297 = vmatmul.bf16.gmra.mxu2 %v1476_v63  ;;  %v1540_v63 = vunpack.c.l.b16 %v1332_v18  ;;  %v1539_v22 = vunpack.c.l.b16 %v1331_v32 }
 0x163   : > { %v1183_v54 = vsel %vm1175_vm11, %v4777_v44, 0.0 }
 0x164   : > { %v1191_v34 = vpack.c.bf16 %v1183_v54, %v1183_v54  ;;  %2268 = vmatmul.bf16.gmra.mxu1 %v1452_v27  ;;  %v1547_v28 = vpack.c.b16 %v1541_v58, %v1540_v63  ;;  %v1546_v54 = vpack.c.b16 %v1539_v22, %v1538_v41 }
 0x166   : > { %v1495_v12 = vunpack.c.l.b16 %v1191_v34  ;;  %v1065_v42 = vpop.permute.xlu1 %1064  ;;  %v1326_v34 = vsel %vm1318_vm13, %v4913_v57, 0.0 }
 0x167   : > { %vm1073_vm14 = vcmp.eq.s32.totalorder %v1065_v42, 1  ;;  %2355 = vmatmul.bf16.gmra.mxu0 %v1524_v1  ;;  %v1334_v1 = vpack.c.bf16 %v1326_v34, %v1326_v34 }
 0x168   : > { %v1081_v44 = vsel %vm1073_vm14, %v4698_v43, 0.0  ;;  %v1500_v33 = vpack.c.b16 %v1495_v12, %v1494_v49  ;;  %v1327_v49 = vsel %vm1319_vm4, %v4906_v48, 0.0 }
 0x169   : > { %v1089_v6 = vpack.c.bf16 %v1081_v44, %v1081_v44  ;;  %v1062_v38 = vpop.permute.xlu0 %1061 }
 0x16a   : > { %vm1072_vm10 = vcmp.eq.s32.totalorder %v1062_v38, 1  ;;  %2326 = vmatmul.bf16.gmra.mxu3 %v1500_v33  ;;  %v1335_v33 = vpack.c.bf16 %v1327_v49, %v1327_v49  ;;  %v1542_v38 = vunpack.c.l.b16 %v1334_v1 }
 0x16b   : > { %v1080_v27 = vsel %vm1072_vm10, %v4906_v48, 0.0  ;;  %v1473_v40 = vunpack.c.l.b16 %v1089_v6 }
 0x16c   : > { %v1088_v25 = vpack.c.bf16 %v1080_v27, %v1080_v27  ;;  %v1543_v13 = vunpack.c.l.b16 %v1335_v33 }
 0x16e   : > { %v1472_v21 = vunpack.c.l.b16 %v1088_v25  ;;  %v1310_v20 = vpop.permute.xlu1 %1309  ;;  %v1548_v31 = vpack.c.b16 %v1543_v13, %v1542_v38 }
 0x16f   : > { %vm1320_vm12 = vcmp.eq.s32.totalorder %v1310_v20, 1 }
 0x170   : > { %v1477_v59 = vpack.c.b16 %v1473_v40, %v1472_v21  ;;  %v1313_v40 = vpop.permute.xlu2 %1312  ;;  %v1328_v46 = vsel %vm1320_vm12, %v4698_v43, 0.0 }
 0x171   : > { %v1169_v10 = vpop.permute.xlu0 %1168  ;;  %vm1321_vm11 = vcmp.eq.s32.totalorder %v1313_v40, 1  ;;  %v1336_v62 = vpack.c.bf16 %v1328_v46, %v1328_v46 }
 0x172   : > { %vm1177_vm3 = vcmp.eq.s32.totalorder %v1169_v10, 1  ;;  %2302 = vmatmul.bf16.gmra.mxu2 %v1477_v59  ;;  %v1329_v19 = vsel %vm1321_vm11, %v4557_v55, 0.0 }
 0x173   : > { %v1185_v17 = vsel %vm1177_vm3, %v5416_v45, 0.0  ;;  %v1337_v45 = vpack.c.bf16 %v1329_v19, %v1329_v19  ;;  %v1544_v15 = vunpack.c.l.b16 %v1336_v62  ;;  %v3091_v19 = vld [vmem:[#allocation7 + $0x20] sm:$0xff] }
 0x174   : > { %v1193_v0 = vpack.c.bf16 %v1185_v17, %v1185_v17  ;;  %2273 = vmatmul.bf16.gmra.mxu1 %v1453_v30 }
 0x176   : > { %v1497_v39 = vunpack.c.l.b16 %v1193_v0 }
 0x177   : > { %2360 = vmatmul.bf16.gmra.mxu0 %v1525_v23 }
 0x178   : > { %v1501_v26 = vpack.c.b16 %v1497_v39, %v1496_v51  ;;  %v1545_v51 = vunpack.c.l.b16 %v1337_v45 }
 0x17a   : > { %2331 = vmatmul.bf16.gmra.mxu3 %v1501_v26  ;;  %v1549_v55 = vpack.c.b16 %v1545_v51, %v1544_v15 }
 0x181   : > { %v2143_v56 = vpop.f32.mrf.mxu1 }
 0x182   : > { %v2144_v8 = vadd.f32 %v5000_v47, %v2143_v56 }
 0x184   : > { %v2172_v11 = vpop.f32.mrf.mxu2  ;;  %v2230_v3 = vpop.f32.mrf.mxu0  ;;  %2379 = vmatmul.bf16.vlgmr.msra.gmra.mxu1 %v1547_v28 }
 0x185   : > { %v2173_v5 = vadd.f32 %v2172_v11, %v2144_v8 }
 0x187   : > { %2374 = vmatmul.bf16.vlgmr.msrb.gmra.mxu0 %v1546_v54 }
 0x189   : > { %v2201_v12 = vpop.f32.mrf.mxu3  ;;  %v2145_v42 = vpop.f32.mrf.mxu1 }
 0x18a   : > { %v2202_v7 = vadd.f32 %v2201_v12, %v2173_v5  ;;  %v2146_v14 = vadd.f32 %v5000_v47, %v2145_v42 }
 0x18c   : > { %v2174_v44 = vpop.f32.mrf.mxu2  ;;  %v2232_v2 = vpop.f32.mrf.mxu0  ;;  %v5008_v6 = vadd.f32 %v2230_v3, %v2202_v7  ;;  %v3094_v3 = vld [vmem:[#allocation7 + $0x38] sm:$0xff] }
 0x18d   : > { %v2175_v52 = vadd.f32 %v2174_v44, %v2146_v14  ;;  %2475 = vmatpush.bf16.msra.mxu2 %v3094_v3  ;;  %3112 = vmatpush.bf16.msrb.mxu3 %v3094_v3  ;;  %v3093_v14 = vld [vmem:[#allocation7 + $0x30] sm:$0xff] }
 0x191   : > { %v2203_v36 = vpop.f32.mrf.mxu3  ;;  %v2148_v57 = vpop.f32.mrf.mxu1  ;;  %2476 = vmatpush.bf16.msra.mxu2 %v3093_v14  ;;  %3113 = vmatpush.bf16.msrb.mxu3 %v3093_v14 }
 0x192   : > { %v2204_v27 = vadd.f32 %v2203_v36, %v2175_v52  ;;  %v2149_v48 = vadd.f32 %v5000_v47, %v2148_v57  ;;  %v3092_v57 = vld [vmem:[#allocation7 + $0x28] sm:$0xff] }
 0x194   : > { %v2177_v25 = vpop.f32.mrf.mxu2  ;;  %v2235_v9 = vpop.f32.mrf.mxu0  ;;  %2384 = vmatmul.bf16.gmra.mxu1 %v1548_v31  ;;  %v5011_v4 = vadd.f32 %v2232_v2, %v2204_v27 }
 0x195   : > { %v2178_v21 = vadd.f32 %v2177_v25, %v2149_v48  ;;  %2477 = vmatpush.bf16.msra.mxu2 %v3092_v57  ;;  %3114 = vmatpush.bf16.msrb.mxu3 %v3092_v57 }
 0x199   : > { %v2206_v35 = vpop.f32.mrf.mxu3  ;;  %v2150_v59 = vpop.f32.mrf.mxu1  ;;  %2478 = vmatpush.bf16.msra.mxu2 %v3091_v19  ;;  %3115 = vmatpush.bf16.msrb.mxu3 %v3091_v19 }
 0x19a   : > { %v2207_v10 = vadd.f32 %v2206_v35, %v2178_v21  ;;  %v2151_v60 = vadd.f32 %v5000_v47, %v2150_v59 }
 0x19c   : > { %v2179_v16 = vpop.f32.mrf.mxu2  ;;  %v2237_v17 = vpop.f32.mrf.mxu0  ;;  %v5016_v30 = vadd.f32 %v2235_v9, %v2207_v10 }
 0x19d   : > { %v2180_v0 = vadd.f32 %v2179_v16, %v2151_v60  ;;  %v3090_v16 = vld [vmem:[#allocation7 + $0x18] sm:$0xff] }
 0x19e   : > { %2479 = vmatpush.bf16.msra.mxu2 %v3090_v16  ;;  %3116 = vmatpush.bf16.msrb.mxu3 %v3090_v16 }
 0x1a1   : > { %v2208_v39 = vpop.f32.mrf.mxu3  ;;  %v2153_v23 = vpop.f32.mrf.mxu1 }
 0x1a2   : > { %v2209_v26 = vadd.f32 %v2208_v39, %v2180_v0  ;;  %v2154_v43 = vadd.f32 %v5000_v47, %v2153_v23  ;;  %v3089_v39 = vld [vmem:[#allocation7 + $0x10] sm:$0xff] }
 0x1a3   : > { %2480 = vmatpush.bf16.msra.mxu2 %v3089_v39  ;;  %3117 = vmatpush.bf16.msrb.mxu3 %v3089_v39 }
 0x1a4   : > { %v2182_v24 = vpop.f32.mrf.mxu2  ;;  %v2240_v29 = vpop.f32.mrf.mxu0  ;;  %2389 = vmatmul.bf16.gmra.mxu1 %v1549_v55  ;;  %v5019_v37 = vadd.f32 %v2237_v17, %v2209_v26 }
 0x1a5   : > { %v2183_v18 = vadd.f32 %v2182_v24, %v2154_v43 }
 0x1a9   : > { %v2211_v61 = vpop.f32.mrf.mxu3  ;;  %v2155_v50 = vpop.f32.mrf.mxu1 }
 0x1aa   : > { %v2212_v32 = vadd.f32 %v2211_v61, %v2183_v18  ;;  %v2156_v63 = vadd.f32 %v5000_v47, %v2155_v50  ;;  %v3087_v61 = vld [vmem:[#allocation7] sm:$0xff] }
 0x1ac   : > { %v2184_v53 = vpop.f32.mrf.mxu2  ;;  %v2242_v58 = vpop.f32.mrf.mxu0  ;;  %v5022_v56 = vadd.f32 %v2240_v29, %v2212_v32  ;;  %v3088_v29 = vld [vmem:[#allocation7 + $0x8] sm:$0xff] }
 0x1ad   : > { %v2185_v22 = vadd.f32 %v2184_v53, %v2156_v63  ;;  %2481 = vmatpush.bf16.msra.mxu2 %v3088_v29  ;;  %3118 = vmatpush.bf16.msrb.mxu3 %v3088_v29 }
 0x1b1   : > { %v2213_v28 = vpop.f32.mrf.mxu3  ;;  %v2158_v8 = vpop.f32.mrf.mxu1  ;;  %2482 = vmatpush.bf16.msra.mxu2 %v3087_v61  ;;  %3119 = vmatpush.bf16.msrb.mxu3 %v3087_v61 }
 0x1b2   : > { %v2214_v41 = vadd.f32 %v2213_v28, %v2185_v22  ;;  %v2159_v11 = vadd.f32 %v5000_v47, %v2158_v8 }
 0x1b4   : > { %v2187_v5 = vpop.f32.mrf.mxu2  ;;  %v2245_v54 = vpop.f32.mrf.mxu0  ;;  %v5025_v49 = vadd.f32 %v2242_v58, %v2214_v41 }
 0x1b5   : > { %v2188_v34 = vadd.f32 %v2187_v5, %v2159_v11 }
 0x1b9   : > { %v2216_v12 = vpop.f32.mrf.mxu3  ;;  %v2160_v42 = vpop.f32.mrf.mxu1 }
 0x1ba   : > { %v2217_v1 = vadd.f32 %v2216_v12, %v2188_v34  ;;  %v2161_v7 = vadd.f32 %v5000_v47, %v2160_v42 }
 0x1bc   : > { %v2189_v44 = vpop.f32.mrf.mxu2  ;;  %v2247_v33 = vpop.f32.mrf.mxu0  ;;  %v5028_v2 = vadd.f32 %v2245_v54, %v2217_v1 }
 0x1bd   : > { %v2190_v52 = vadd.f32 %v2189_v44, %v2161_v7 }
 0x1c1   : > { %v2218_v38 = vpop.f32.mrf.mxu3  ;;  %v2259_v13 = vpop.f32.mrf.mxu1 }
 0x1c2   : > { %v2219_v20 = vadd.f32 %v2218_v38, %v2190_v52  ;;  %v2260_v36 = vadd.f32 %v2259_v13, %v5008_v6 }
 0x1c4   : > { %v2288_v27 = vpop.f32.mrf.mxu2  ;;  %v2346_v48 = vpop.f32.mrf.mxu0  ;;  %v5031_v31 = vadd.f32 %v2247_v33, %v2219_v20 }
 0x1c5   : > { %v2289_v47 = vadd.f32 %v2288_v27, %v2260_v36 }
 0x1c9   : > { %v2317_v40 = vpop.f32.mrf.mxu3  ;;  %v2261_v25 = vpop.f32.mrf.mxu1 }
 0x1ca   : > { %v2318_v9 = vadd.f32 %v2317_v40, %v2289_v47  ;;  %v2262_v3 = vadd.f32 %v2261_v25, %v5011_v4 }
 0x1cc   : > { %v2290_v21 = vpop.f32.mrf.mxu2  ;;  %v2348_v46 = vpop.f32.mrf.mxu0  ;;  %v2347_v35 = vadd.f32 %v2346_v48, %v2318_v9 }
 0x1cd   : > { %v2291_v34 = vadd.f32 %v2290_v21, %v2262_v3 }
 0x1d1   : > { %v2319_v59 = vpop.f32.mrf.mxu3  ;;  %v2264_v62 = vpop.f32.mrf.mxu1 }
 0x1d2   : > { %v2265_v6 = vadd.f32 %v2264_v62, %v5016_v30  ;;  %v2320_v1 = vadd.f32 %v2319_v59, %v2291_v34  ;;  %v3202_v34 = vld [vmem:[%s3526_s18 + $0x10] sm:$0xff] }
 0x1d4   : > { %v2293_v10 = vpop.f32.mrf.mxu2  ;;  %v2351_v60 = vpop.f32.mrf.mxu0  ;;  %v2349_v13 = vadd.f32 %v2348_v46, %v2320_v1 }
 0x1d5   : > { %v2294_v45 = vadd.f32 %v2293_v10, %v2265_v6 }
 0x1d9   : > { %v2322_v17 = vpop.f32.mrf.mxu3  ;;  %v2266_v0 = vpop.f32.mrf.mxu1 }
 0x1da   : > { %v2323_v15 = vadd.f32 %v2322_v17, %v2294_v45  ;;  %v2267_v11 = vadd.f32 %v2266_v0, %v5019_v37 }
 0x1dc   : > { %v2353_v51 = vpop.f32.mrf.mxu0  ;;  %v2352_v23 = vadd.f32 %v2351_v60, %v2323_v15  ;;  %v2295_v26 = vpop.f32.mrf.mxu2 }
 0x1dd   : > { %v2296_v5 = vadd.f32 %v2295_v26, %v2267_v11  ;;  %v3201_v11 = vld [vmem:[%s3526_s18 + $0x8] sm:$0xff] }
 0x1e1   : > { %v2324_v43 = vpop.f32.mrf.mxu3  ;;  %v2269_v55 = vpop.f32.mrf.mxu1 }
 0x1e2   : > { %v2270_v24 = vadd.f32 %v2269_v55, %v5022_v56  ;;  %v2325_v12 = vadd.f32 %v2324_v43, %v2296_v5 }
 0x1e4   : > { %v2356_v30 = vpop.f32.mrf.mxu0  ;;  %v2354_v14 = vadd.f32 %v2353_v51, %v2325_v12 }
 0x1e5   : > { %v2298_v18 = vpop.f32.mrf.mxu2 }
 0x1e6   : > { %v2299_v32 = vadd.f32 %v2298_v18, %v2270_v24 }
 0x1e9   : > { %v2271_v50 = vpop.f32.mrf.mxu1 }
 0x1ea   : > { %v2272_v4 = vadd.f32 %v2271_v50, %v5025_v49  ;;  %v3199_v50 = vld [vmem:[%s5104_s7] ss:$0 sm:$0xff] }
 0x1ec   : > { %v2358_v58 = vpop.f32.mrf.mxu0 }
 0x1ed   : > { %v2327_v63 = vpop.f32.mrf.mxu3  ;;  %v2300_v52 = vpop.f32.mrf.mxu2 }
 0x1ee   : > { %v2328_v53 = vadd.f32 %v2327_v63, %v2299_v32  ;;  %v2301_v21 = vadd.f32 %v2300_v52, %v2272_v4 }
 0x1f0   : > { %v2357_v22 = vadd.f32 %v2356_v30, %v2328_v53 }
 0x1f1   : > { %v2274_v28 = vpop.f32.mrf.mxu1 }
 0x1f2   : > { %v2275_v60 = vadd.f32 %v2274_v28, %v5028_v2 }
 0x1f4   : > { %v2361_v8 = vpop.f32.mrf.mxu0 }
 0x1f5   : > { %v2329_v37 = vpop.f32.mrf.mxu3  ;;  %v2303_v59 = vpop.f32.mrf.mxu2 }
 0x1f6   : > { %v2330_v19 = vadd.f32 %v2329_v37, %v2301_v21  ;;  %v2304_v15 = vadd.f32 %v2303_v59, %v2275_v60  ;;  %v3206_v21 = vld [vmem:[%s3526_s18 + $0x38] sm:$0xff] }
 0x1f9   : > { %v2276_v41 = vpop.f32.mrf.mxu1 }
 0x1fa   : > { %v2277_v49 = vadd.f32 %v2276_v41, %v5031_v31 }
 0x1fc   : > { %v2363_v56 = vpop.f32.mrf.mxu0 }
 0x1fd   : > { %v2332_v62 = vpop.f32.mrf.mxu3  ;;  %v2305_v0 = vpop.f32.mrf.mxu2 }
 0x1fe   : > { %v2306_v26 = vadd.f32 %v2305_v0, %v2277_v49 }
 0x201   : > { %v2380_v54 = vpop.f32.mrf.mxu1 }
 0x202   : > { %v2381_v7 = vadd.f32 %v2380_v54, %v2352_v23  ;;  %v2333_v23 = vadd.f32 %v2332_v62, %v2304_v15  ;;  %v3207_v62 = vld [vmem:[%s3526_s18 + $0x28] sm:$0xff] }
 0x204   : > { %v2375_v42 = vpop.f32.mrf.mxu0  ;;  %v2397_v20 = vmax.f32 %v2381_v7, 0.0  ;;  %v2362_v55 = vadd.f32 %v2361_v8, %v2333_v23 }
 0x205   : > { %v2376_v38 = vadd.f32 %v2375_v42, %v2347_v35  ;;  %v2359_v35 = vadd.f32 %v2358_v58, %v2330_v19  ;;  %v2334_v51 = vpop.f32.mrf.mxu3  ;;  %v3200_v58 = vld [vmem:[%s3526_s18] sm:$0xff] }
 0x206   : > { %v2335_v43 = vadd.f32 %v2334_v51, %v2306_v26 }
 0x207   : > { %v2395_v47 = vmax.f32 %v2376_v38, 0.0 }
 0x208   : > { %v2364_v30 = vadd.f32 %v2363_v56, %v2335_v43 }
 0x209   : > { %v2382_v44 = vpop.f32.mrf.mxu1 }
 0x20a   : > { %v2383_v33 = vadd.f32 %v2382_v44, %v2354_v14  ;;  %v3203_v14 = vld [vmem:[%s3526_s18 + $0x18] sm:$0xff] }
 0x20c   : > { %v2377_v36 = vpop.f32.mrf.mxu0  ;;  %v2398_v57 = vmax.f32 %v2383_v33, 0.0 }
 0x20d   : > { %v2378_v27 = vadd.f32 %v2377_v36, %v2349_v13  ;;  %v3204_v36 = vld [vmem:[%s3526_s18 + $0x30] sm:$0xff] }
 0x20e   : > { %v2404_v48 = vpack.c.bf16 %v2398_v57, %v2397_v20 }
 0x20f   : > { %v2396_v40 = vmax.f32 %v2378_v27, 0.0  ;;  %v3205_v27 = vld [vmem:[%s3526_s18 + $0x20] sm:$0xff] }
 0x211   : > { %v2403_v25 = vpack.c.bf16 %v2396_v40, %v2395_v47  ;;  %v2385_v9 = vpop.f32.mrf.mxu1 }
 0x212   : > { %v2386_v6 = vadd.f32 %v2385_v9, %v2357_v22 }
 0x213   : > { %2483 = vmatmul.bf16.vlgmr.msra.gmra.mxu2 %v2403_v25 }
 0x214   : > { %v2399_v16 = vmax.f32 %v2386_v6, 0.0 }
 0x219   : > { %v2387_v46 = vpop.f32.mrf.mxu1 }
 0x21a   : > { %v2388_v10 = vadd.f32 %v2387_v46, %v2359_v35 }
 0x21c   : > { %v2400_v45 = vmax.f32 %v2388_v10, 0.0 }
 0x21e   : > { %v2405_v17 = vpack.c.bf16 %v2400_v45, %v2399_v16 }
 0x221   : > { %v2390_v39 = vpop.f32.mrf.mxu1 }
 0x222   : > { %v2391_v24 = vadd.f32 %v2390_v39, %v2362_v55 }
 0x223   : > { %2488 = vmatmul.bf16.gmra.mxu2 %v2404_v48 }
 0x224   : > { %v2401_v18 = vmax.f32 %v2391_v24, 0.0 }
 0x229   : > { %v2392_v29 = vpop.f32.mrf.mxu1 }
 0x22a   : > { %v2393_v2 = vadd.f32 %v2392_v29, %v2364_v30 }
 0x22c   : > { %v2402_v61 = vmax.f32 %v2393_v2, 0.0 }
 0x22e   : > { %v2406_v31 = vpack.c.bf16 %v2402_v61, %v2401_v18 }
 0x230   : > { %2498 = vmatmul.bf16.vlgmr.msrb.gmra.mxu3 %v2406_v31 }
 0x233   : > { %2493 = vmatmul.bf16.gmra.mxu2 %v2405_v17 }
 0x296   : > { %v2484_v32 = vpop.f32.mrf.mxu2 }
 0x297   : > { %v2485_v63 = vadd.f32 %v3199_v50, %v2484_v32 }
 0x299   : > { %v2504_v53 = vmax.f32 %v2485_v63, 0.0 }
 0x29b   : > { %v2512_v22 = vadd.f32 %v3200_v58, %v2504_v53 }
 0x29d   : > { %2520 = vst [vmem:[%s5046_s25] sm:$0xff] %v2512_v22 }
 0x29e   : > { %v2486_v28 = vpop.f32.mrf.mxu2 }
 0x29f   : > { %v2487_v8 = vadd.f32 %v3199_v50, %v2486_v28 }
 0x2a1   : > { %v2505_v41 = vmax.f32 %v2487_v8, 0.0 }
 0x2a3   : > { %v2513_v56 = vadd.f32 %v3201_v11, %v2505_v41 }
 0x2a5   : > { %2521 = vst [vmem:[%s5046_s25 + $0x8] sm:$0xff] %v2513_v56 }
 0x2a6   : > { %v2489_v3 = vpop.f32.mrf.mxu2 }
 0x2a7   : > { %v2490_v5 = vadd.f32 %v3199_v50, %v2489_v3 }
 0x2a9   : > { %v2506_v54 = vmax.f32 %v2490_v5, 0.0 }
 0x2ab   : > { %v2514_v12 = vadd.f32 %v3202_v34, %v2506_v54 }
 0x2ad   : > { %2522 = vst [vmem:[%s5046_s25 + $0x10] sm:$0xff] %v2514_v12 }
 0x2ae   : > { %v2491_v42 = vpop.f32.mrf.mxu2 }
 0x2af   : > { %v2492_v1 = vadd.f32 %v3199_v50, %v2491_v42 }
 0x2b1   : > { %v2507_v7 = vmax.f32 %v2492_v1, 0.0 }
 0x2b3   : > { %v2515_v44 = vadd.f32 %v3203_v14, %v2507_v7  ;;  %v2499_v33 = vpop.f32.mrf.mxu3 }
 0x2b4   : > { %v2500_v52 = vadd.f32 %v3199_v50, %v2499_v33 }
 0x2b5   : > { %2523 = vst [vmem:[%s5046_s25 + $0x18] sm:$0xff] %v2515_v44 }
 0x2b6   : > { %v2494_v38 = vpop.f32.mrf.mxu2  ;;  %v2510_v13 = vmax.f32 %v2500_v52, 0.0 }
 0x2b7   : > { %v2495_v20 = vadd.f32 %v3199_v50, %v2494_v38 }
 0x2b8   : > { %v2518_v57 = vadd.f32 %v3204_v36, %v2510_v13 }
 0x2b9   : > { %v2508_v37 = vmax.f32 %v2495_v20, 0.0 }
 0x2ba   : > { %2526 = vst [vmem:[%s5046_s25 + $0x30] sm:$0xff] %v2518_v57 }
 0x2bb   : > { %v2516_v4 = vadd.f32 %v3205_v27, %v2508_v37  ;;  %v2501_v48 = vpop.f32.mrf.mxu3 }
 0x2bc   : > { %v2502_v47 = vadd.f32 %v3199_v50, %v2501_v48 }
 0x2bd   : > { %2524 = vst [vmem:[%s5046_s25 + $0x20] sm:$0xff] %v2516_v4 }
 0x2be   : > { %v2496_v40 = vpop.f32.mrf.mxu2  ;;  %v2511_v25 = vmax.f32 %v2502_v47, 0.0 }
 0x2bf   : > { %v2497_v9 = vadd.f32 %v3199_v50, %v2496_v40 }
 0x2c0   : > { %v2519_v19 = vadd.f32 %v3206_v21, %v2511_v25 }
 0x2c1   : > { %v2509_v59 = vmax.f32 %v2497_v9, 0.0 }
 0x2c2   : > { %2527 = vst [vmem:[%s5046_s25 + $0x38] sm:$0xff] %v2519_v19 }
 0x2c3   : > { %v2517_v6 = vadd.f32 %v3207_v62, %v2509_v59 }
 0x2c5   : > { %2525 = vst [vmem:[%s5046_s25 + $0x28] sm:$0xff] %v2517_v6 }
 0x2c6   : > { %3325 = shalt.err (!%p3322_p10)
}
 0x2c7   : > { %s3377_s19 = smov 128   ;;  %s3378_s18 = smov 8  }
 0x2c8   : > { %3130 = dma.vmem_to_hbm [thread:$0]  (%p3490_p3), %s2542_s20, 1024, %s2544_s9, %s2529_s21, %s3377_s19, %s3377_s19, %s3378_s18  }
 0x2c9 PF: > { %s2558_s25 = sand.u32 1, %s3356_s27   ;;  %p5417_p12 = scmp.ge.s32.totalorder %s3368_s30, 2 }
 0x2ca   : > { %s2559_s11 = scalar_lea.sflag [#allocation4], %s2558_s25 }
 0x2cb   : > { %p3144_p13 = pnand %p5417_p12, %p3459_p6 }
 0x2cd   : > { %p3145_p0 = pneg %p3144_p13 }
 0x2cf   : > { %3351 = dma.done.wait (%p3145_p0), %s2559_s11, 1024  }
 0x2d0   : > { %3353 = vsyncadd (%p3145_p0), %s2559_s11, 4294966272  ;;  %p22_p5 = scmp.ge.s32.totalorder %s3480_s26, 4   ;;  %s5418_s27 = smov %s3360_s28 }
 0x2d1   : > { %s5419_s28 = smov %s3364_s29  ;;  %s5420_s29 = smov %s3496_s15 }
 0x2d2   : > { %s5421_s30 = smov %s3480_s26  ;;  %24 = sbr.rel (!%p22_p5) target bundleno = 9 (0x9), region = 105 }
 0x2d7   :  { %2565 = vsyncpa [#allocation3], 1 }
 0x2d8   :  { %2567 = vsyncpa [#allocation3 + $0x1], 1 }
 0x2d9   :  { %2568 = vsyncpa [#allocation6], 1 }
 0x2da   :  { %2569 = vsyncpa [#allocation4], 1 }
 0x2db   :  { %2571 = vsyncpa [#allocation4 + $0x1], 1 }

</bundles_post_ra>
